<compile_context>
chip_gen: v7x
topology: tpu7x:2x2x1
jax: 0.10.0
libtpu: 0.0.40
codegen_flags: <defaults>
</compile_context>

<pallas_src>
import jax
import jax.numpy as jnp
from jax import lax
from jax.experimental import pallas as pl
from jax.experimental.pallas import tpu as pltpu

LW = 256      # lane width per row-group (multiple of 128)
R_SUB = 8     # sublane rows per inner strip (one full (8,128) sublane tile)
R_MAX = 256   # max row-groups per grid block (~2 MiB input block)

# Packed-parameter layout (flat f32[87]):
#   [0:48)   w1 (8,6)  row-major: w1[k, j] at 6*k + j
#   [48:54)  b1 (6,)
#   [54:78)  w2 (6,4)  row-major: w2[k, j] at 54 + 4*k + j
#   [78:82)  b2 (4,)
#   [82:86)  w3 (4,)
#   [86]     b3
W1_OFF, B1_OFF = 0, 48
W2_OFF, B2_OFF = 54, 78
W3_OFF, B3_OFF = 82, 86
N_PARAMS = 87


def _sigmoid(x):
    # sigmoid(x) == 0.5*tanh(0.5*x) + 0.5 exactly: one EUP tanh, 3 VALU ops.
    return jnp.tanh(x * 0.5) * 0.5 + 0.5


def mlp_kernel(p_ref, x_ref, o_ref):
    # p_ref: (87,) f32 in SMEM (scalar parameters).
    # x_ref: (8, R_BLK, LW) block -- feature, row-group (sublanes), lanes.
    # o_ref: (R_BLK, LW) block -- dense, unmasked lane-wide stores.

    # Hoist every scalar parameter read out of the inner strip-mine loop.
    w1 = [[p_ref[W1_OFF + 6 * k + j] for j in range(6)] for k in range(8)]
    b1 = [p_ref[B1_OFF + j] for j in range(6)]
    w2 = [[p_ref[W2_OFF + 4 * k + j] for j in range(4)] for k in range(6)]
    b2 = [p_ref[B2_OFF + j] for j in range(4)]
    w3 = [p_ref[W3_OFF + k] for k in range(4)]
    b3 = p_ref[B3_OFF]

    # Static per-feature ref views (zero runtime cost).
    x_feat = [x_ref.at[k] for k in range(8)]   # each: (R_BLK, LW) ref view

    r_blk = x_ref.shape[1]
    n_sub = r_blk // R_SUB

    def sub_tile(r, carry):
        base = pl.multiple_of(r * R_SUB, R_SUB)
        # 8 dense (R_SUB, LW) planes of activations for this sub-tile.
        xs = [f[pl.ds(base, R_SUB), :] for f in x_feat]

        # Layer 1: 8 -> 6 (VPU broadcast multiply/add + EUP sigmoid).
        h1 = []
        for j in range(6):
            acc = xs[0] * w1[0][j]
            for k in range(1, 8):
                acc = acc + xs[k] * w1[k][j]
            h1.append(_sigmoid(acc + b1[j]))

        # Layer 2: 6 -> 4.
        h2 = []
        for j in range(4):
            acc = h1[0] * w2[0][j]
            for k in range(1, 6):
                acc = acc + h1[k] * w2[k][j]
            h2.append(_sigmoid(acc + b2[j]))

        # Layer 3: 4 -> 1.
        acc = h2[0] * w3[0]
        for k in range(1, 4):
            acc = acc + h2[k] * w3[k]
        o_ref[pl.ds(base, R_SUB), :] = _sigmoid(acc + b3)
        return carry

    lax.fori_loop(0, n_sub, sub_tile, 0)


def pack_params(params):
    w1, b1, w2, b2, w3, b3 = params
    flat = jnp.concatenate([
        w1.reshape(-1), b1.reshape(-1),
        w2.reshape(-1), b2.reshape(-1),
        w3.reshape(-1), b3.reshape(-1),
    ]).astype(jnp.float32)
    assert flat.shape == (N_PARAMS,)
    return flat


def _round_up(a, m):
    return ((a + m - 1) // m) * m


def mlp_forward(x, params):
    """x: (B, 8) f32 -> (B, 1) f32, matching the PyTorch Model.forward."""
    B = x.shape[0]
    assert x.shape[1] == 8
    flat = pack_params(params)

    # Row-groups of LW batch elements each, padded only to the sub-tile /
    # block granularity (not a giant fixed bm).
    rows = _round_up(max(-(-B // LW), 1), R_SUB)
    # Target >= ~4 grid tiles on large batches (keeps v7x's 2nd TensorCore
    # busy); cap block rows at R_MAX (~2 MiB input block, well under VMEM).
    r_blk = min(R_MAX, max(R_SUB, (rows // (4 * R_SUB)) * R_SUB))
    rows_p = _round_up(rows, r_blk)
    bp = rows_p * LW

    # Feature-major, lane-dense padded layout (8, rows_p, LW).
    # TODO(synk): callers that already hold the batch feature-major (8, B) can
    # pass it directly and skip this single transpose+pad copy (matters most
    # on bandwidth-limited v5e).
    xt = jnp.zeros((8, bp), jnp.float32).at[:, :B].set(x.T)
    xt = xt.reshape(8, rows_p, LW)   # free row-major view

    out = pl.pallas_call(
        mlp_kernel,
        out_shape=jax.ShapeDtypeStruct((rows_p, LW), jnp.float32),
        grid=(rows_p // r_blk,),
        in_specs=[
            # single packed parameter vector, resident in SMEM
            pl.BlockSpec(memory_space=pltpu.MemorySpace.SMEM),
            # (8, r_blk, LW) activation tiles, pipelined by the BlockSpec
            pl.BlockSpec((8, r_blk, LW), lambda i: (0, i, 0)),
        ],
        out_specs=pl.BlockSpec((r_blk, LW), lambda i: (i, 0)),
        compiler_params=pltpu.CompilerParams(
            dimension_semantics=("parallel",)),
    )(flat, xt)

    # Row-major flatten restores original batch order; drop padding.
    return out.reshape(bp)[:B].reshape(B, 1)


def init_params(key):
    # Deterministic init mimicking nn.Linear's U(-1/sqrt(fan_in), 1/sqrt(fan_in)).
    def linear(key, fan_in, fan_out):
        kw, kb = jax.random.split(key)
        bound = 1.0 / jnp.sqrt(fan_in)
        w = jax.random.uniform(kw, (fan_in, fan_out), jnp.float32, -bound, bound)
        b = jax.random.uniform(kb, (1, fan_out), jnp.float32, -bound, bound)
        return w, b

    k1, k2, k3 = jax.random.split(key, 3)
    w1, b1 = linear(k1, 8, 6)
    w2, b2 = linear(k2, 6, 4)
    w3, b3 = linear(k3, 4, 1)
    return w1, b1, w2, b2, w3, b3


def _reference(x, params):
    w1, b1, w2, b2, w3, b3 = params
    h = jax.nn.sigmoid(x @ w1 + b1)
    h = jax.nn.sigmoid(h @ w2 + b2)
    return jax.nn.sigmoid(h @ w3 + b3)


if __name__ == "__main__":
    key = jax.random.PRNGKey(0)
    kx, kp = jax.random.split(key)
    params = init_params(kp)

    ok = True
    # B=8: tiny-batch demo (single tile, heavy padding).
    # B=3000: not a multiple of 128/256 and exercises the multi-tile grid path.
    for B in (8, 3000):
        x = jax.random.normal(jax.random.fold_in(kx, B), (B, 8), jnp.float32)
        out = mlp_forward(x, params)
        jax.block_until_ready(out)
        ref = _reference(x, params)
        ok = ok and (out.shape == (B, 1))
        ok = ok and bool(jnp.allclose(out, ref, atol=1e-5, rtol=1e-5))
    assert ok

    print("KERNEL_OK")
</pallas_src>

<mosaic_0001>
module attributes {stable_mosaic.version = 11 : i64} {
  func.func @mlp_kernel(%arg0: i32, %arg1: memref<87xf32, #tpu.memory_space<smem>>, %arg2: memref<8x8x256xf32, #tpu.memory_space<vmem>>, %arg3: memref<8x256xf32, #tpu.memory_space<vmem>>) attributes {dimension_semantics = [#tpu.dimension_semantics<parallel>], iteration_bounds = array<i64: 1>, scalar_prefetch = 0 : i64, scratch_operands = 0 : i64, tpu.core_type = #tpu.core_type<tc>, window_params = [{transform_indices = @transform_0, window_bounds = array<i64: 87>}, {transform_indices = @transform_1, window_bounds = array<i64: 8, 8, 256>}, {transform_indices = @transform_2, window_bounds = array<i64: 8, 256>}]} {
    %c0 = arith.constant 0 : index
    %0 = memref.load %arg1[%c0] : memref<87xf32, #tpu.memory_space<smem>>
    %c1 = arith.constant 1 : index
    %1 = memref.load %arg1[%c1] : memref<87xf32, #tpu.memory_space<smem>>
    %c2 = arith.constant 2 : index
    %2 = memref.load %arg1[%c2] : memref<87xf32, #tpu.memory_space<smem>>
    %c3 = arith.constant 3 : index
    %3 = memref.load %arg1[%c3] : memref<87xf32, #tpu.memory_space<smem>>
    %c4 = arith.constant 4 : index
    %4 = memref.load %arg1[%c4] : memref<87xf32, #tpu.memory_space<smem>>
    %c5 = arith.constant 5 : index
    %5 = memref.load %arg1[%c5] : memref<87xf32, #tpu.memory_space<smem>>
    %c6 = arith.constant 6 : index
    %6 = memref.load %arg1[%c6] : memref<87xf32, #tpu.memory_space<smem>>
    %c7 = arith.constant 7 : index
    %7 = memref.load %arg1[%c7] : memref<87xf32, #tpu.memory_space<smem>>
    %c8 = arith.constant 8 : index
    %8 = memref.load %arg1[%c8] : memref<87xf32, #tpu.memory_space<smem>>
    %c9 = arith.constant 9 : index
    %9 = memref.load %arg1[%c9] : memref<87xf32, #tpu.memory_space<smem>>
    %c10 = arith.constant 10 : index
    %10 = memref.load %arg1[%c10] : memref<87xf32, #tpu.memory_space<smem>>
    %c11 = arith.constant 11 : index
    %11 = memref.load %arg1[%c11] : memref<87xf32, #tpu.memory_space<smem>>
    %c12 = arith.constant 12 : index
    %12 = memref.load %arg1[%c12] : memref<87xf32, #tpu.memory_space<smem>>
    %c13 = arith.constant 13 : index
    %13 = memref.load %arg1[%c13] : memref<87xf32, #tpu.memory_space<smem>>
    %c14 = arith.constant 14 : index
    %14 = memref.load %arg1[%c14] : memref<87xf32, #tpu.memory_space<smem>>
    %c15 = arith.constant 15 : index
    %15 = memref.load %arg1[%c15] : memref<87xf32, #tpu.memory_space<smem>>
    %c16 = arith.constant 16 : index
    %16 = memref.load %arg1[%c16] : memref<87xf32, #tpu.memory_space<smem>>
    %c17 = arith.constant 17 : index
    %17 = memref.load %arg1[%c17] : memref<87xf32, #tpu.memory_space<smem>>
    %c18 = arith.constant 18 : index
    %18 = memref.load %arg1[%c18] : memref<87xf32, #tpu.memory_space<smem>>
    %c19 = arith.constant 19 : index
    %19 = memref.load %arg1[%c19] : memref<87xf32, #tpu.memory_space<smem>>
    %c20 = arith.constant 20 : index
    %20 = memref.load %arg1[%c20] : memref<87xf32, #tpu.memory_space<smem>>
    %c21 = arith.constant 21 : index
    %21 = memref.load %arg1[%c21] : memref<87xf32, #tpu.memory_space<smem>>
    %c22 = arith.constant 22 : index
    %22 = memref.load %arg1[%c22] : memref<87xf32, #tpu.memory_space<smem>>
    %c23 = arith.constant 23 : index
    %23 = memref.load %arg1[%c23] : memref<87xf32, #tpu.memory_space<smem>>
    %c24 = arith.constant 24 : index
    %24 = memref.load %arg1[%c24] : memref<87xf32, #tpu.memory_space<smem>>
    %c25 = arith.constant 25 : index
    %25 = memref.load %arg1[%c25] : memref<87xf32, #tpu.memory_space<smem>>
    %c26 = arith.constant 26 : index
    %26 = memref.load %arg1[%c26] : memref<87xf32, #tpu.memory_space<smem>>
    %c27 = arith.constant 27 : index
    %27 = memref.load %arg1[%c27] : memref<87xf32, #tpu.memory_space<smem>>
    %c28 = arith.constant 28 : index
    %28 = memref.load %arg1[%c28] : memref<87xf32, #tpu.memory_space<smem>>
    %c29 = arith.constant 29 : index
    %29 = memref.load %arg1[%c29] : memref<87xf32, #tpu.memory_space<smem>>
    %c30 = arith.constant 30 : index
    %30 = memref.load %arg1[%c30] : memref<87xf32, #tpu.memory_space<smem>>
    %c31 = arith.constant 31 : index
    %31 = memref.load %arg1[%c31] : memref<87xf32, #tpu.memory_space<smem>>
    %c32 = arith.constant 32 : index
    %32 = memref.load %arg1[%c32] : memref<87xf32, #tpu.memory_space<smem>>
    %c33 = arith.constant 33 : index
    %33 = memref.load %arg1[%c33] : memref<87xf32, #tpu.memory_space<smem>>
    %c34 = arith.constant 34 : index
    %34 = memref.load %arg1[%c34] : memref<87xf32, #tpu.memory_space<smem>>
    %c35 = arith.constant 35 : index
    %35 = memref.load %arg1[%c35] : memref<87xf32, #tpu.memory_space<smem>>
    %c36 = arith.constant 36 : index
    %36 = memref.load %arg1[%c36] : memref<87xf32, #tpu.memory_space<smem>>
    %c37 = arith.constant 37 : index
    %37 = memref.load %arg1[%c37] : memref<87xf32, #tpu.memory_space<smem>>
    %c38 = arith.constant 38 : index
    %38 = memref.load %arg1[%c38] : memref<87xf32, #tpu.memory_space<smem>>
    %c39 = arith.constant 39 : index
    %39 = memref.load %arg1[%c39] : memref<87xf32, #tpu.memory_space<smem>>
    %c40 = arith.constant 40 : index
    %40 = memref.load %arg1[%c40] : memref<87xf32, #tpu.memory_space<smem>>
    %c41 = arith.constant 41 : index
    %41 = memref.load %arg1[%c41] : memref<87xf32, #tpu.memory_space<smem>>
    %c42 = arith.constant 42 : index
    %42 = memref.load %arg1[%c42] : memref<87xf32, #tpu.memory_space<smem>>
    %c43 = arith.constant 43 : index
    %43 = memref.load %arg1[%c43] : memref<87xf32, #tpu.memory_space<smem>>
    %c44 = arith.constant 44 : index
    %44 = memref.load %arg1[%c44] : memref<87xf32, #tpu.memory_space<smem>>
    %c45 = arith.constant 45 : index
    %45 = memref.load %arg1[%c45] : memref<87xf32, #tpu.memory_space<smem>>
    %c46 = arith.constant 46 : index
    %46 = memref.load %arg1[%c46] : memref<87xf32, #tpu.memory_space<smem>>
    %c47 = arith.constant 47 : index
    %47 = memref.load %arg1[%c47] : memref<87xf32, #tpu.memory_space<smem>>
    %c48 = arith.constant 48 : index
    %48 = memref.load %arg1[%c48] : memref<87xf32, #tpu.memory_space<smem>>
    %c49 = arith.constant 49 : index
    %49 = memref.load %arg1[%c49] : memref<87xf32, #tpu.memory_space<smem>>
    %c50 = arith.constant 50 : index
    %50 = memref.load %arg1[%c50] : memref<87xf32, #tpu.memory_space<smem>>
    %c51 = arith.constant 51 : index
    %51 = memref.load %arg1[%c51] : memref<87xf32, #tpu.memory_space<smem>>
    %c52 = arith.constant 52 : index
    %52 = memref.load %arg1[%c52] : memref<87xf32, #tpu.memory_space<smem>>
    %c53 = arith.constant 53 : index
    %53 = memref.load %arg1[%c53] : memref<87xf32, #tpu.memory_space<smem>>
    %c54 = arith.constant 54 : index
    %54 = memref.load %arg1[%c54] : memref<87xf32, #tpu.memory_space<smem>>
    %c55 = arith.constant 55 : index
    %55 = memref.load %arg1[%c55] : memref<87xf32, #tpu.memory_space<smem>>
    %c56 = arith.constant 56 : index
    %56 = memref.load %arg1[%c56] : memref<87xf32, #tpu.memory_space<smem>>
    %c57 = arith.constant 57 : index
    %57 = memref.load %arg1[%c57] : memref<87xf32, #tpu.memory_space<smem>>
    %c58 = arith.constant 58 : index
    %58 = memref.load %arg1[%c58] : memref<87xf32, #tpu.memory_space<smem>>
    %c59 = arith.constant 59 : index
    %59 = memref.load %arg1[%c59] : memref<87xf32, #tpu.memory_space<smem>>
    %c60 = arith.constant 60 : index
    %60 = memref.load %arg1[%c60] : memref<87xf32, #tpu.memory_space<smem>>
    %c61 = arith.constant 61 : index
    %61 = memref.load %arg1[%c61] : memref<87xf32, #tpu.memory_space<smem>>
    %c62 = arith.constant 62 : index
    %62 = memref.load %arg1[%c62] : memref<87xf32, #tpu.memory_space<smem>>
    %c63 = arith.constant 63 : index
    %63 = memref.load %arg1[%c63] : memref<87xf32, #tpu.memory_space<smem>>
    %c64 = arith.constant 64 : index
    %64 = memref.load %arg1[%c64] : memref<87xf32, #tpu.memory_space<smem>>
    %c65 = arith.constant 65 : index
    %65 = memref.load %arg1[%c65] : memref<87xf32, #tpu.memory_space<smem>>
    %c66 = arith.constant 66 : index
    %66 = memref.load %arg1[%c66] : memref<87xf32, #tpu.memory_space<smem>>
    %c67 = arith.constant 67 : index
    %67 = memref.load %arg1[%c67] : memref<87xf32, #tpu.memory_space<smem>>
    %c68 = arith.constant 68 : index
    %68 = memref.load %arg1[%c68] : memref<87xf32, #tpu.memory_space<smem>>
    %c69 = arith.constant 69 : index
    %69 = memref.load %arg1[%c69] : memref<87xf32, #tpu.memory_space<smem>>
    %c70 = arith.constant 70 : index
    %70 = memref.load %arg1[%c70] : memref<87xf32, #tpu.memory_space<smem>>
    %c71 = arith.constant 71 : index
    %71 = memref.load %arg1[%c71] : memref<87xf32, #tpu.memory_space<smem>>
    %c72 = arith.constant 72 : index
    %72 = memref.load %arg1[%c72] : memref<87xf32, #tpu.memory_space<smem>>
    %c73 = arith.constant 73 : index
    %73 = memref.load %arg1[%c73] : memref<87xf32, #tpu.memory_space<smem>>
    %c74 = arith.constant 74 : index
    %74 = memref.load %arg1[%c74] : memref<87xf32, #tpu.memory_space<smem>>
    %c75 = arith.constant 75 : index
    %75 = memref.load %arg1[%c75] : memref<87xf32, #tpu.memory_space<smem>>
    %c76 = arith.constant 76 : index
    %76 = memref.load %arg1[%c76] : memref<87xf32, #tpu.memory_space<smem>>
    %c77 = arith.constant 77 : index
    %77 = memref.load %arg1[%c77] : memref<87xf32, #tpu.memory_space<smem>>
    %c78 = arith.constant 78 : index
    %78 = memref.load %arg1[%c78] : memref<87xf32, #tpu.memory_space<smem>>
    %c79 = arith.constant 79 : index
    %79 = memref.load %arg1[%c79] : memref<87xf32, #tpu.memory_space<smem>>
    %c80 = arith.constant 80 : index
    %80 = memref.load %arg1[%c80] : memref<87xf32, #tpu.memory_space<smem>>
    %c81 = arith.constant 81 : index
    %81 = memref.load %arg1[%c81] : memref<87xf32, #tpu.memory_space<smem>>
    %c82 = arith.constant 82 : index
    %82 = memref.load %arg1[%c82] : memref<87xf32, #tpu.memory_space<smem>>
    %c83 = arith.constant 83 : index
    %83 = memref.load %arg1[%c83] : memref<87xf32, #tpu.memory_space<smem>>
    %c84 = arith.constant 84 : index
    %84 = memref.load %arg1[%c84] : memref<87xf32, #tpu.memory_space<smem>>
    %c85 = arith.constant 85 : index
    %85 = memref.load %arg1[%c85] : memref<87xf32, #tpu.memory_space<smem>>
    %c86 = arith.constant 86 : index
    %86 = memref.load %arg1[%c86] : memref<87xf32, #tpu.memory_space<smem>>
    %c0_i32 = arith.constant 0 : i32
    %c1_i32 = arith.constant 1 : i32
    %c2_i32 = arith.constant 2 : i32
    %c3_i32 = arith.constant 3 : i32
    %c4_i32 = arith.constant 4 : i32
    %c5_i32 = arith.constant 5 : i32
    %c6_i32 = arith.constant 6 : i32
    %c7_i32 = arith.constant 7 : i32
    %c0_i32_0 = arith.constant 0 : i32
    %c8_i32 = arith.constant 8 : i32
    %87 = arith.muli %c0_i32_0, %c8_i32 : i32
    %88 = tpu.assume_multiple %87, 8 : i32
    %c0_i32_1 = arith.constant 0 : i32
    %c0_i32_2 = arith.constant 0 : i32
    %89 = tpu.memref_slice %arg2[%c0_i32, %c0_i32_1, %c0_i32_2] : memref<8x8x256xf32, #tpu.memory_space<vmem>> -> memref<1x8x256xf32, #tpu.memory_space<vmem>>
    %90 = tpu.memref_squeeze %89 : memref<1x8x256xf32, #tpu.memory_space<vmem>> -> memref<8x256xf32, #tpu.memory_space<vmem>>
    %91 = arith.index_cast %88 : i32 to index
    %c0_3 = arith.constant 0 : index
    %92 = vector.load %90[%91, %c0_3] : memref<8x256xf32, #tpu.memory_space<vmem>>, vector<8x256xf32>
    %c0_i32_4 = arith.constant 0 : i32
    %c0_i32_5 = arith.constant 0 : i32
    %93 = tpu.memref_slice %arg2[%c1_i32, %c0_i32_4, %c0_i32_5] : memref<8x8x256xf32, #tpu.memory_space<vmem>> -> memref<1x8x256xf32, #tpu.memory_space<vmem>>
    %94 = tpu.memref_squeeze %93 : memref<1x8x256xf32, #tpu.memory_space<vmem>> -> memref<8x256xf32, #tpu.memory_space<vmem>>
    %95 = arith.index_cast %88 : i32 to index
    %c0_6 = arith.constant 0 : index
    %96 = vector.load %94[%95, %c0_6] : memref<8x256xf32, #tpu.memory_space<vmem>>, vector<8x256xf32>
    %c0_i32_7 = arith.constant 0 : i32
    %c0_i32_8 = arith.constant 0 : i32
    %97 = tpu.memref_slice %arg2[%c2_i32, %c0_i32_7, %c0_i32_8] : memref<8x8x256xf32, #tpu.memory_space<vmem>> -> memref<1x8x256xf32, #tpu.memory_space<vmem>>
    %98 = tpu.memref_squeeze %97 : memref<1x8x256xf32, #tpu.memory_space<vmem>> -> memref<8x256xf32, #tpu.memory_space<vmem>>
    %99 = arith.index_cast %88 : i32 to index
    %c0_9 = arith.constant 0 : index
    %100 = vector.load %98[%99, %c0_9] : memref<8x256xf32, #tpu.memory_space<vmem>>, vector<8x256xf32>
    %c0_i32_10 = arith.constant 0 : i32
    %c0_i32_11 = arith.constant 0 : i32
    %101 = tpu.memref_slice %arg2[%c3_i32, %c0_i32_10, %c0_i32_11] : memref<8x8x256xf32, #tpu.memory_space<vmem>> -> memref<1x8x256xf32, #tpu.memory_space<vmem>>
    %102 = tpu.memref_squeeze %101 : memref<1x8x256xf32, #tpu.memory_space<vmem>> -> memref<8x256xf32, #tpu.memory_space<vmem>>
    %103 = arith.index_cast %88 : i32 to index
    %c0_12 = arith.constant 0 : index
    %104 = vector.load %102[%103, %c0_12] : memref<8x256xf32, #tpu.memory_space<vmem>>, vector<8x256xf32>
    %c0_i32_13 = arith.constant 0 : i32
    %c0_i32_14 = arith.constant 0 : i32
    %105 = tpu.memref_slice %arg2[%c4_i32, %c0_i32_13, %c0_i32_14] : memref<8x8x256xf32, #tpu.memory_space<vmem>> -> memref<1x8x256xf32, #tpu.memory_space<vmem>>
    %106 = tpu.memref_squeeze %105 : memref<1x8x256xf32, #tpu.memory_space<vmem>> -> memref<8x256xf32, #tpu.memory_space<vmem>>
    %107 = arith.index_cast %88 : i32 to index
    %c0_15 = arith.constant 0 : index
    %108 = vector.load %106[%107, %c0_15] : memref<8x256xf32, #tpu.memory_space<vmem>>, vector<8x256xf32>
    %c0_i32_16 = arith.constant 0 : i32
    %c0_i32_17 = arith.constant 0 : i32
    %109 = tpu.memref_slice %arg2[%c5_i32, %c0_i32_16, %c0_i32_17] : memref<8x8x256xf32, #tpu.memory_space<vmem>> -> memref<1x8x256xf32, #tpu.memory_space<vmem>>
    %110 = tpu.memref_squeeze %109 : memref<1x8x256xf32, #tpu.memory_space<vmem>> -> memref<8x256xf32, #tpu.memory_space<vmem>>
    %111 = arith.index_cast %88 : i32 to index
    %c0_18 = arith.constant 0 : index
    %112 = vector.load %110[%111, %c0_18] : memref<8x256xf32, #tpu.memory_space<vmem>>, vector<8x256xf32>
    %c0_i32_19 = arith.constant 0 : i32
    %c0_i32_20 = arith.constant 0 : i32
    %113 = tpu.memref_slice %arg2[%c6_i32, %c0_i32_19, %c0_i32_20] : memref<8x8x256xf32, #tpu.memory_space<vmem>> -> memref<1x8x256xf32, #tpu.memory_space<vmem>>
    %114 = tpu.memref_squeeze %113 : memref<1x8x256xf32, #tpu.memory_space<vmem>> -> memref<8x256xf32, #tpu.memory_space<vmem>>
    %115 = arith.index_cast %88 : i32 to index
    %c0_21 = arith.constant 0 : index
    %116 = vector.load %114[%115, %c0_21] : memref<8x256xf32, #tpu.memory_space<vmem>>, vector<8x256xf32>
    %c0_i32_22 = arith.constant 0 : i32
    %c0_i32_23 = arith.constant 0 : i32
    %117 = tpu.memref_slice %arg2[%c7_i32, %c0_i32_22, %c0_i32_23] : memref<8x8x256xf32, #tpu.memory_space<vmem>> -> memref<1x8x256xf32, #tpu.memory_space<vmem>>
    %118 = tpu.memref_squeeze %117 : memref<1x8x256xf32, #tpu.memory_space<vmem>> -> memref<8x256xf32, #tpu.memory_space<vmem>>
    %119 = arith.index_cast %88 : i32 to index
    %c0_24 = arith.constant 0 : index
    %120 = vector.load %118[%119, %c0_24] : memref<8x256xf32, #tpu.memory_space<vmem>>, vector<8x256xf32>
    %121 = vector.broadcast %0 : f32 to vector<8x256xf32>
    %122 = arith.mulf %92, %121 : vector<8x256xf32>
    %123 = vector.broadcast %6 : f32 to vector<8x256xf32>
    %124 = arith.mulf %96, %123 : vector<8x256xf32>
    %125 = arith.addf %122, %124 : vector<8x256xf32>
    %126 = vector.broadcast %12 : f32 to vector<8x256xf32>
    %127 = arith.mulf %100, %126 : vector<8x256xf32>
    %128 = arith.addf %125, %127 : vector<8x256xf32>
    %129 = vector.broadcast %18 : f32 to vector<8x256xf32>
    %130 = arith.mulf %104, %129 : vector<8x256xf32>
    %131 = arith.addf %128, %130 : vector<8x256xf32>
    %132 = vector.broadcast %24 : f32 to vector<8x256xf32>
    %133 = arith.mulf %108, %132 : vector<8x256xf32>
    %134 = arith.addf %131, %133 : vector<8x256xf32>
    %135 = vector.broadcast %30 : f32 to vector<8x256xf32>
    %136 = arith.mulf %112, %135 : vector<8x256xf32>
    %137 = arith.addf %134, %136 : vector<8x256xf32>
    %138 = vector.broadcast %36 : f32 to vector<8x256xf32>
    %139 = arith.mulf %116, %138 : vector<8x256xf32>
    %140 = arith.addf %137, %139 : vector<8x256xf32>
    %141 = vector.broadcast %42 : f32 to vector<8x256xf32>
    %142 = arith.mulf %120, %141 : vector<8x256xf32>
    %143 = arith.addf %140, %142 : vector<8x256xf32>
    %144 = vector.broadcast %48 : f32 to vector<8x256xf32>
    %145 = arith.addf %143, %144 : vector<8x256xf32>
    %cst = arith.constant 5.000000e-01 : f32
    %146 = vector.broadcast %cst : f32 to vector<8x256xf32>
    %147 = arith.mulf %145, %146 : vector<8x256xf32>
    %148 = math.tanh %147 : vector<8x256xf32>
    %cst_25 = arith.constant 5.000000e-01 : f32
    %149 = vector.broadcast %cst_25 : f32 to vector<8x256xf32>
    %150 = arith.mulf %148, %149 : vector<8x256xf32>
    %cst_26 = arith.constant 5.000000e-01 : f32
    %151 = vector.broadcast %cst_26 : f32 to vector<8x256xf32>
    %152 = arith.addf %150, %151 : vector<8x256xf32>
    %153 = vector.broadcast %1 : f32 to vector<8x256xf32>
    %154 = arith.mulf %92, %153 : vector<8x256xf32>
    %155 = vector.broadcast %7 : f32 to vector<8x256xf32>
    %156 = arith.mulf %96, %155 : vector<8x256xf32>
    %157 = arith.addf %154, %156 : vector<8x256xf32>
    %158 = vector.broadcast %13 : f32 to vector<8x256xf32>
    %159 = arith.mulf %100, %158 : vector<8x256xf32>
    %160 = arith.addf %157, %159 : vector<8x256xf32>
    %161 = vector.broadcast %19 : f32 to vector<8x256xf32>
    %162 = arith.mulf %104, %161 : vector<8x256xf32>
    %163 = arith.addf %160, %162 : vector<8x256xf32>
    %164 = vector.broadcast %25 : f32 to vector<8x256xf32>
    %165 = arith.mulf %108, %164 : vector<8x256xf32>
    %166 = arith.addf %163, %165 : vector<8x256xf32>
    %167 = vector.broadcast %31 : f32 to vector<8x256xf32>
    %168 = arith.mulf %112, %167 : vector<8x256xf32>
    %169 = arith.addf %166, %168 : vector<8x256xf32>
    %170 = vector.broadcast %37 : f32 to vector<8x256xf32>
    %171 = arith.mulf %116, %170 : vector<8x256xf32>
    %172 = arith.addf %169, %171 : vector<8x256xf32>
    %173 = vector.broadcast %43 : f32 to vector<8x256xf32>
    %174 = arith.mulf %120, %173 : vector<8x256xf32>
    %175 = arith.addf %172, %174 : vector<8x256xf32>
    %176 = vector.broadcast %49 : f32 to vector<8x256xf32>
    %177 = arith.addf %175, %176 : vector<8x256xf32>
    %cst_27 = arith.constant 5.000000e-01 : f32
    %178 = vector.broadcast %cst_27 : f32 to vector<8x256xf32>
    %179 = arith.mulf %177, %178 : vector<8x256xf32>
    %180 = math.tanh %179 : vector<8x256xf32>
    %cst_28 = arith.constant 5.000000e-01 : f32
    %181 = vector.broadcast %cst_28 : f32 to vector<8x256xf32>
    %182 = arith.mulf %180, %181 : vector<8x256xf32>
    %cst_29 = arith.constant 5.000000e-01 : f32
    %183 = vector.broadcast %cst_29 : f32 to vector<8x256xf32>
    %184 = arith.addf %182, %183 : vector<8x256xf32>
    %185 = vector.broadcast %2 : f32 to vector<8x256xf32>
    %186 = arith.mulf %92, %185 : vector<8x256xf32>
    %187 = vector.broadcast %8 : f32 to vector<8x256xf32>
    %188 = arith.mulf %96, %187 : vector<8x256xf32>
    %189 = arith.addf %186, %188 : vector<8x256xf32>
    %190 = vector.broadcast %14 : f32 to vector<8x256xf32>
    %191 = arith.mulf %100, %190 : vector<8x256xf32>
    %192 = arith.addf %189, %191 : vector<8x256xf32>
    %193 = vector.broadcast %20 : f32 to vector<8x256xf32>
    %194 = arith.mulf %104, %193 : vector<8x256xf32>
    %195 = arith.addf %192, %194 : vector<8x256xf32>
    %196 = vector.broadcast %26 : f32 to vector<8x256xf32>
    %197 = arith.mulf %108, %196 : vector<8x256xf32>
    %198 = arith.addf %195, %197 : vector<8x256xf32>
    %199 = vector.broadcast %32 : f32 to vector<8x256xf32>
    %200 = arith.mulf %112, %199 : vector<8x256xf32>
    %201 = arith.addf %198, %200 : vector<8x256xf32>
    %202 = vector.broadcast %38 : f32 to vector<8x256xf32>
    %203 = arith.mulf %116, %202 : vector<8x256xf32>
    %204 = arith.addf %201, %203 : vector<8x256xf32>
    %205 = vector.broadcast %44 : f32 to vector<8x256xf32>
    %206 = arith.mulf %120, %205 : vector<8x256xf32>
    %207 = arith.addf %204, %206 : vector<8x256xf32>
    %208 = vector.broadcast %50 : f32 to vector<8x256xf32>
    %209 = arith.addf %207, %208 : vector<8x256xf32>
    %cst_30 = arith.constant 5.000000e-01 : f32
    %210 = vector.broadcast %cst_30 : f32 to vector<8x256xf32>
    %211 = arith.mulf %209, %210 : vector<8x256xf32>
    %212 = math.tanh %211 : vector<8x256xf32>
    %cst_31 = arith.constant 5.000000e-01 : f32
    %213 = vector.broadcast %cst_31 : f32 to vector<8x256xf32>
    %214 = arith.mulf %212, %213 : vector<8x256xf32>
    %cst_32 = arith.constant 5.000000e-01 : f32
    %215 = vector.broadcast %cst_32 : f32 to vector<8x256xf32>
    %216 = arith.addf %214, %215 : vector<8x256xf32>
    %217 = vector.broadcast %3 : f32 to vector<8x256xf32>
    %218 = arith.mulf %92, %217 : vector<8x256xf32>
    %219 = vector.broadcast %9 : f32 to vector<8x256xf32>
    %220 = arith.mulf %96, %219 : vector<8x256xf32>
    %221 = arith.addf %218, %220 : vector<8x256xf32>
    %222 = vector.broadcast %15 : f32 to vector<8x256xf32>
    %223 = arith.mulf %100, %222 : vector<8x256xf32>
    %224 = arith.addf %221, %223 : vector<8x256xf32>
    %225 = vector.broadcast %21 : f32 to vector<8x256xf32>
    %226 = arith.mulf %104, %225 : vector<8x256xf32>
    %227 = arith.addf %224, %226 : vector<8x256xf32>
    %228 = vector.broadcast %27 : f32 to vector<8x256xf32>
    %229 = arith.mulf %108, %228 : vector<8x256xf32>
    %230 = arith.addf %227, %229 : vector<8x256xf32>
    %231 = vector.broadcast %33 : f32 to vector<8x256xf32>
    %232 = arith.mulf %112, %231 : vector<8x256xf32>
    %233 = arith.addf %230, %232 : vector<8x256xf32>
    %234 = vector.broadcast %39 : f32 to vector<8x256xf32>
    %235 = arith.mulf %116, %234 : vector<8x256xf32>
    %236 = arith.addf %233, %235 : vector<8x256xf32>
    %237 = vector.broadcast %45 : f32 to vector<8x256xf32>
    %238 = arith.mulf %120, %237 : vector<8x256xf32>
    %239 = arith.addf %236, %238 : vector<8x256xf32>
    %240 = vector.broadcast %51 : f32 to vector<8x256xf32>
    %241 = arith.addf %239, %240 : vector<8x256xf32>
    %cst_33 = arith.constant 5.000000e-01 : f32
    %242 = vector.broadcast %cst_33 : f32 to vector<8x256xf32>
    %243 = arith.mulf %241, %242 : vector<8x256xf32>
    %244 = math.tanh %243 : vector<8x256xf32>
    %cst_34 = arith.constant 5.000000e-01 : f32
    %245 = vector.broadcast %cst_34 : f32 to vector<8x256xf32>
    %246 = arith.mulf %244, %245 : vector<8x256xf32>
    %cst_35 = arith.constant 5.000000e-01 : f32
    %247 = vector.broadcast %cst_35 : f32 to vector<8x256xf32>
    %248 = arith.addf %246, %247 : vector<8x256xf32>
    %249 = vector.broadcast %4 : f32 to vector<8x256xf32>
    %250 = arith.mulf %92, %249 : vector<8x256xf32>
    %251 = vector.broadcast %10 : f32 to vector<8x256xf32>
    %252 = arith.mulf %96, %251 : vector<8x256xf32>
    %253 = arith.addf %250, %252 : vector<8x256xf32>
    %254 = vector.broadcast %16 : f32 to vector<8x256xf32>
    %255 = arith.mulf %100, %254 : vector<8x256xf32>
    %256 = arith.addf %253, %255 : vector<8x256xf32>
    %257 = vector.broadcast %22 : f32 to vector<8x256xf32>
    %258 = arith.mulf %104, %257 : vector<8x256xf32>
    %259 = arith.addf %256, %258 : vector<8x256xf32>
    %260 = vector.broadcast %28 : f32 to vector<8x256xf32>
    %261 = arith.mulf %108, %260 : vector<8x256xf32>
    %262 = arith.addf %259, %261 : vector<8x256xf32>
    %263 = vector.broadcast %34 : f32 to vector<8x256xf32>
    %264 = arith.mulf %112, %263 : vector<8x256xf32>
    %265 = arith.addf %262, %264 : vector<8x256xf32>
    %266 = vector.broadcast %40 : f32 to vector<8x256xf32>
    %267 = arith.mulf %116, %266 : vector<8x256xf32>
    %268 = arith.addf %265, %267 : vector<8x256xf32>
    %269 = vector.broadcast %46 : f32 to vector<8x256xf32>
    %270 = arith.mulf %120, %269 : vector<8x256xf32>
    %271 = arith.addf %268, %270 : vector<8x256xf32>
    %272 = vector.broadcast %52 : f32 to vector<8x256xf32>
    %273 = arith.addf %271, %272 : vector<8x256xf32>
    %cst_36 = arith.constant 5.000000e-01 : f32
    %274 = vector.broadcast %cst_36 : f32 to vector<8x256xf32>
    %275 = arith.mulf %273, %274 : vector<8x256xf32>
    %276 = math.tanh %275 : vector<8x256xf32>
    %cst_37 = arith.constant 5.000000e-01 : f32
    %277 = vector.broadcast %cst_37 : f32 to vector<8x256xf32>
    %278 = arith.mulf %276, %277 : vector<8x256xf32>
    %cst_38 = arith.constant 5.000000e-01 : f32
    %279 = vector.broadcast %cst_38 : f32 to vector<8x256xf32>
    %280 = arith.addf %278, %279 : vector<8x256xf32>
    %281 = vector.broadcast %5 : f32 to vector<8x256xf32>
    %282 = arith.mulf %92, %281 : vector<8x256xf32>
    %283 = vector.broadcast %11 : f32 to vector<8x256xf32>
    %284 = arith.mulf %96, %283 : vector<8x256xf32>
    %285 = arith.addf %282, %284 : vector<8x256xf32>
    %286 = vector.broadcast %17 : f32 to vector<8x256xf32>
    %287 = arith.mulf %100, %286 : vector<8x256xf32>
    %288 = arith.addf %285, %287 : vector<8x256xf32>
    %289 = vector.broadcast %23 : f32 to vector<8x256xf32>
    %290 = arith.mulf %104, %289 : vector<8x256xf32>
    %291 = arith.addf %288, %290 : vector<8x256xf32>
    %292 = vector.broadcast %29 : f32 to vector<8x256xf32>
    %293 = arith.mulf %108, %292 : vector<8x256xf32>
    %294 = arith.addf %291, %293 : vector<8x256xf32>
    %295 = vector.broadcast %35 : f32 to vector<8x256xf32>
    %296 = arith.mulf %112, %295 : vector<8x256xf32>
    %297 = arith.addf %294, %296 : vector<8x256xf32>
    %298 = vector.broadcast %41 : f32 to vector<8x256xf32>
    %299 = arith.mulf %116, %298 : vector<8x256xf32>
    %300 = arith.addf %297, %299 : vector<8x256xf32>
    %301 = vector.broadcast %47 : f32 to vector<8x256xf32>
    %302 = arith.mulf %120, %301 : vector<8x256xf32>
    %303 = arith.addf %300, %302 : vector<8x256xf32>
    %304 = vector.broadcast %53 : f32 to vector<8x256xf32>
    %305 = arith.addf %303, %304 : vector<8x256xf32>
    %cst_39 = arith.constant 5.000000e-01 : f32
    %306 = vector.broadcast %cst_39 : f32 to vector<8x256xf32>
    %307 = arith.mulf %305, %306 : vector<8x256xf32>
    %308 = math.tanh %307 : vector<8x256xf32>
    %cst_40 = arith.constant 5.000000e-01 : f32
    %309 = vector.broadcast %cst_40 : f32 to vector<8x256xf32>
    %310 = arith.mulf %308, %309 : vector<8x256xf32>
    %cst_41 = arith.constant 5.000000e-01 : f32
    %311 = vector.broadcast %cst_41 : f32 to vector<8x256xf32>
    %312 = arith.addf %310, %311 : vector<8x256xf32>
    %313 = vector.broadcast %54 : f32 to vector<8x256xf32>
    %314 = arith.mulf %152, %313 : vector<8x256xf32>
    %315 = vector.broadcast %58 : f32 to vector<8x256xf32>
    %316 = arith.mulf %184, %315 : vector<8x256xf32>
    %317 = arith.addf %314, %316 : vector<8x256xf32>
    %318 = vector.broadcast %62 : f32 to vector<8x256xf32>
    %319 = arith.mulf %216, %318 : vector<8x256xf32>
    %320 = arith.addf %317, %319 : vector<8x256xf32>
    %321 = vector.broadcast %66 : f32 to vector<8x256xf32>
    %322 = arith.mulf %248, %321 : vector<8x256xf32>
    %323 = arith.addf %320, %322 : vector<8x256xf32>
    %324 = vector.broadcast %70 : f32 to vector<8x256xf32>
    %325 = arith.mulf %280, %324 : vector<8x256xf32>
    %326 = arith.addf %323, %325 : vector<8x256xf32>
    %327 = vector.broadcast %74 : f32 to vector<8x256xf32>
    %328 = arith.mulf %312, %327 : vector<8x256xf32>
    %329 = arith.addf %326, %328 : vector<8x256xf32>
    %330 = vector.broadcast %78 : f32 to vector<8x256xf32>
    %331 = arith.addf %329, %330 : vector<8x256xf32>
    %cst_42 = arith.constant 5.000000e-01 : f32
    %332 = vector.broadcast %cst_42 : f32 to vector<8x256xf32>
    %333 = arith.mulf %331, %332 : vector<8x256xf32>
    %334 = math.tanh %333 : vector<8x256xf32>
    %cst_43 = arith.constant 5.000000e-01 : f32
    %335 = vector.broadcast %cst_43 : f32 to vector<8x256xf32>
    %336 = arith.mulf %334, %335 : vector<8x256xf32>
    %cst_44 = arith.constant 5.000000e-01 : f32
    %337 = vector.broadcast %cst_44 : f32 to vector<8x256xf32>
    %338 = arith.addf %336, %337 : vector<8x256xf32>
    %339 = vector.broadcast %55 : f32 to vector<8x256xf32>
    %340 = arith.mulf %152, %339 : vector<8x256xf32>
    %341 = vector.broadcast %59 : f32 to vector<8x256xf32>
    %342 = arith.mulf %184, %341 : vector<8x256xf32>
    %343 = arith.addf %340, %342 : vector<8x256xf32>
    %344 = vector.broadcast %63 : f32 to vector<8x256xf32>
    %345 = arith.mulf %216, %344 : vector<8x256xf32>
    %346 = arith.addf %343, %345 : vector<8x256xf32>
    %347 = vector.broadcast %67 : f32 to vector<8x256xf32>
    %348 = arith.mulf %248, %347 : vector<8x256xf32>
    %349 = arith.addf %346, %348 : vector<8x256xf32>
    %350 = vector.broadcast %71 : f32 to vector<8x256xf32>
    %351 = arith.mulf %280, %350 : vector<8x256xf32>
    %352 = arith.addf %349, %351 : vector<8x256xf32>
    %353 = vector.broadcast %75 : f32 to vector<8x256xf32>
    %354 = arith.mulf %312, %353 : vector<8x256xf32>
    %355 = arith.addf %352, %354 : vector<8x256xf32>
    %356 = vector.broadcast %79 : f32 to vector<8x256xf32>
    %357 = arith.addf %355, %356 : vector<8x256xf32>
    %cst_45 = arith.constant 5.000000e-01 : f32
    %358 = vector.broadcast %cst_45 : f32 to vector<8x256xf32>
    %359 = arith.mulf %357, %358 : vector<8x256xf32>
    %360 = math.tanh %359 : vector<8x256xf32>
    %cst_46 = arith.constant 5.000000e-01 : f32
    %361 = vector.broadcast %cst_46 : f32 to vector<8x256xf32>
    %362 = arith.mulf %360, %361 : vector<8x256xf32>
    %cst_47 = arith.constant 5.000000e-01 : f32
    %363 = vector.broadcast %cst_47 : f32 to vector<8x256xf32>
    %364 = arith.addf %362, %363 : vector<8x256xf32>
    %365 = vector.broadcast %56 : f32 to vector<8x256xf32>
    %366 = arith.mulf %152, %365 : vector<8x256xf32>
    %367 = vector.broadcast %60 : f32 to vector<8x256xf32>
    %368 = arith.mulf %184, %367 : vector<8x256xf32>
    %369 = arith.addf %366, %368 : vector<8x256xf32>
    %370 = vector.broadcast %64 : f32 to vector<8x256xf32>
    %371 = arith.mulf %216, %370 : vector<8x256xf32>
    %372 = arith.addf %369, %371 : vector<8x256xf32>
    %373 = vector.broadcast %68 : f32 to vector<8x256xf32>
    %374 = arith.mulf %248, %373 : vector<8x256xf32>
    %375 = arith.addf %372, %374 : vector<8x256xf32>
    %376 = vector.broadcast %72 : f32 to vector<8x256xf32>
    %377 = arith.mulf %280, %376 : vector<8x256xf32>
    %378 = arith.addf %375, %377 : vector<8x256xf32>
    %379 = vector.broadcast %76 : f32 to vector<8x256xf32>
    %380 = arith.mulf %312, %379 : vector<8x256xf32>
    %381 = arith.addf %378, %380 : vector<8x256xf32>
    %382 = vector.broadcast %80 : f32 to vector<8x256xf32>
    %383 = arith.addf %381, %382 : vector<8x256xf32>
    %cst_48 = arith.constant 5.000000e-01 : f32
    %384 = vector.broadcast %cst_48 : f32 to vector<8x256xf32>
    %385 = arith.mulf %383, %384 : vector<8x256xf32>
    %386 = math.tanh %385 : vector<8x256xf32>
    %cst_49 = arith.constant 5.000000e-01 : f32
    %387 = vector.broadcast %cst_49 : f32 to vector<8x256xf32>
    %388 = arith.mulf %386, %387 : vector<8x256xf32>
    %cst_50 = arith.constant 5.000000e-01 : f32
    %389 = vector.broadcast %cst_50 : f32 to vector<8x256xf32>
    %390 = arith.addf %388, %389 : vector<8x256xf32>
    %391 = vector.broadcast %57 : f32 to vector<8x256xf32>
    %392 = arith.mulf %152, %391 : vector<8x256xf32>
    %393 = vector.broadcast %61 : f32 to vector<8x256xf32>
    %394 = arith.mulf %184, %393 : vector<8x256xf32>
    %395 = arith.addf %392, %394 : vector<8x256xf32>
    %396 = vector.broadcast %65 : f32 to vector<8x256xf32>
    %397 = arith.mulf %216, %396 : vector<8x256xf32>
    %398 = arith.addf %395, %397 : vector<8x256xf32>
    %399 = vector.broadcast %69 : f32 to vector<8x256xf32>
    %400 = arith.mulf %248, %399 : vector<8x256xf32>
    %401 = arith.addf %398, %400 : vector<8x256xf32>
    %402 = vector.broadcast %73 : f32 to vector<8x256xf32>
    %403 = arith.mulf %280, %402 : vector<8x256xf32>
    %404 = arith.addf %401, %403 : vector<8x256xf32>
    %405 = vector.broadcast %77 : f32 to vector<8x256xf32>
    %406 = arith.mulf %312, %405 : vector<8x256xf32>
    %407 = arith.addf %404, %406 : vector<8x256xf32>
    %408 = vector.broadcast %81 : f32 to vector<8x256xf32>
    %409 = arith.addf %407, %408 : vector<8x256xf32>
    %cst_51 = arith.constant 5.000000e-01 : f32
    %410 = vector.broadcast %cst_51 : f32 to vector<8x256xf32>
    %411 = arith.mulf %409, %410 : vector<8x256xf32>
    %412 = math.tanh %411 : vector<8x256xf32>
    %cst_52 = arith.constant 5.000000e-01 : f32
    %413 = vector.broadcast %cst_52 : f32 to vector<8x256xf32>
    %414 = arith.mulf %412, %413 : vector<8x256xf32>
    %cst_53 = arith.constant 5.000000e-01 : f32
    %415 = vector.broadcast %cst_53 : f32 to vector<8x256xf32>
    %416 = arith.addf %414, %415 : vector<8x256xf32>
    %417 = vector.broadcast %82 : f32 to vector<8x256xf32>
    %418 = arith.mulf %338, %417 : vector<8x256xf32>
    %419 = vector.broadcast %83 : f32 to vector<8x256xf32>
    %420 = arith.mulf %364, %419 : vector<8x256xf32>
    %421 = arith.addf %418, %420 : vector<8x256xf32>
    %422 = vector.broadcast %84 : f32 to vector<8x256xf32>
    %423 = arith.mulf %390, %422 : vector<8x256xf32>
    %424 = arith.addf %421, %423 : vector<8x256xf32>
    %425 = vector.broadcast %85 : f32 to vector<8x256xf32>
    %426 = arith.mulf %416, %425 : vector<8x256xf32>
    %427 = arith.addf %424, %426 : vector<8x256xf32>
    %428 = vector.broadcast %86 : f32 to vector<8x256xf32>
    %429 = arith.addf %427, %428 : vector<8x256xf32>
    %cst_54 = arith.constant 5.000000e-01 : f32
    %430 = vector.broadcast %cst_54 : f32 to vector<8x256xf32>
    %431 = arith.mulf %429, %430 : vector<8x256xf32>
    %432 = math.tanh %431 : vector<8x256xf32>
    %cst_55 = arith.constant 5.000000e-01 : f32
    %433 = vector.broadcast %cst_55 : f32 to vector<8x256xf32>
    %434 = arith.mulf %432, %433 : vector<8x256xf32>
    %cst_56 = arith.constant 5.000000e-01 : f32
    %435 = vector.broadcast %cst_56 : f32 to vector<8x256xf32>
    %436 = arith.addf %434, %435 : vector<8x256xf32>
    %437 = arith.index_cast %88 : i32 to index
    %c0_57 = arith.constant 0 : index
    %438 = vector.load %arg3[%437, %c0_57] : memref<8x256xf32, #tpu.memory_space<vmem>>, vector<8x256xf32>
    tpu.vector_store %arg3[%437, %c0_57], %436 {strides = array<i32>} : memref<8x256xf32, #tpu.memory_space<vmem>>, vector<8x256xf32>,
    %c1_i32_58 = arith.constant 1 : i32
    return
  }
  func.func @transform_0(%arg0: i32) -> i32 {
    %c0_i32 = arith.constant 0 : i32
    %c0_i32_0 = arith.constant 0 : i32
    return %c0_i32 : i32
  }
  func.func @transform_1(%arg0: i32) -> (i32, i32, i32) {
    %c0_i32 = arith.constant 0 : i32
    %c0_i32_0 = arith.constant 0 : i32
    %c0_i32_1 = arith.constant 0 : i32
    return %c0_i32, %arg0, %c0_i32_0 : i32, i32, i32
  }
  func.func @transform_2(%arg0: i32) -> (i32, i32) {
    %c0_i32 = arith.constant 0 : i32
    %c0_i32_0 = arith.constant 0 : i32
    return %arg0, %c0_i32 : i32, i32
  }
}

</mosaic_0001>

<bundles_post_ra>
// kernel: tpu_custom_call.1
= control target key start
LH: loop header
LB: loop body
LE: loop exit
PB: predicated region body
PF: predicated region fallthrough
CT: control target
= control target key end

     0   :  { %7 = vsyncpa [#allocation5], 0  ;;  %s1379_s0 = inlined_call_operand.hbm [shape: f32[87], index: 0, kind: input, shape index: {}]   ;;  %s1380_s1 = inlined_call_operand.hbm [shape: f32[8,8,256], index: 1, kind: input, shape index: {}]   ;;  %s1381_s2 = inlined_call_operand.hbm [shape: f32[8,256], index: 2, kind: output, shape index: {}]  }
   0x1   :  { %8 = vsyncpa [#allocation3], 0 }
   0x2   :  { %9 = vsyncpa [#allocation4], 0  ;;  %s805_s11 = scalar_lea.hbm %s1379_s0, 16 }
   0x3   :  { %p806_p0 = scmp.ne.s32.totalorder %s1379_s0, %s805_s11  ;;  %p809_p1 = scmp.lt.u32.totalorder %s805_s11, %s1379_s0 }
   0x5   :  { %p811_p2 = pnand %p809_p1, %p806_p0 }
   0x7   :  { %814 = shalt.err (!%p811_p2)
}
   0x8   :  { %s865_s16 = smov [#allocation2]   ;;  %s866_s19 = smov [#allocation6]  }
   0x9   :  { %17 = dma.hbm_to_smem %s1379_s0, 16, %s865_s16, [#allocation5]  }
   0xa   :  { %s23_s20 = sshll.u32 %s866_s19, 4  ;;  %s815_s23 = scalar_lea.hbm %s1380_s1, 2048  ;;  %s24_s20 = int_to_ptr.vmem [resolvable:$true] %s23_s20 }
   0xb   :  { %p816_p3 = scmp.ne.s32.totalorder %s1380_s1, %s815_s23  ;;  %p819_p4 = scmp.lt.u32.totalorder %s815_s23, %s1380_s1 }
   0xd   :  { %p821_p5 = pnand %p819_p4, %p816_p3 }
   0xf   :  { %824 = shalt.err (!%p821_p5)
}
  0x10   :  { %s825_s28 = scalar_lea.vmem %s24_s20, 2048  ;;  %p830_p7 = scmp.lt.s32.totalorder %s24_s20, %s24_s20 }
  0x11   :  { %p826_p6 = scmp.ne.s32.totalorder %s24_s20, %s825_s28  ;;  %p831_p8 = scmp.lt.s32.totalorder %s825_s28, %s825_s28 }
  0x13   :  { %p832_p9 = por %p831_p8, %p830_p7 }
  0x15   :  { %p833_p10 = pnand %p832_p9, %p826_p6 }
  0x17   :  { %836 = shalt.err (!%p833_p10)
}
  0x18   :  { %s867_s0 = smov 256   ;;  %s868_s29 = smov 16  }
  0x19   :  { %29 = dma.hbm_to_vmem [thread:$0]  %s1380_s1, 2048, %s24_s20, [#allocation3], %s867_s0, %s867_s0, %s868_s29  }
  0x1a   :  { %859 = dma.done.wait [#allocation5], 16  }
  0x1b   :  { %860 = vsyncadd [#allocation5], 4294967280 }
  0x1c   :  { %861 = dma.done.wait [#allocation3], 2048  }
  0x1d   :  { %862 = vsyncadd [#allocation3], 4294965248 }
  0x1e   :  { %36 = sfence }
  0x1f   :  { %s37_s4 = sld [smem:[#allocation2]]  ;;  %s670_s5 = sld [smem:[#allocation2 + $0x1]]  ;;  %v919_v0 = vld [vmem:[#allocation6] sm:$0xff]  ;;  %v921_v1 = vld [vmem:[#allocation6 + $0x8] sm:$0xff]  ;;  %v927_v4 = vld [vmem:[#allocation6 + $0x10] sm:$0xff] }
  0x20   :  { %s671_s6 = sld [smem:[#allocation2 + $0x2]]  ;;  %s909_s7 = sld [smem:[#allocation2 + $0x3]]  ;;  %v929_v5 = vld [vmem:[#allocation6 + $0x18] sm:$0xff]  ;;  %v944_v18 = vld [vmem:[#allocation6 + $0x20] sm:$0xff]  ;;  %v946_v19 = vld [vmem:[#allocation6 + $0x28] sm:$0xff] }
  0x21   :  { %s911_s8 = sld [smem:[#allocation2 + $0x4]]  ;;  %s913_s9 = sld [smem:[#allocation2 + $0x5]]  ;;  %v969_v32 = vld [vmem:[#allocation6 + $0x30] sm:$0xff]  ;;  %v971_v33 = vld [vmem:[#allocation6 + $0x38] sm:$0xff]  ;;  %v986_v46 = vld [vmem:[#allocation6 + $0x40] sm:$0xff] }
  0x22   :  { %s675_s10 = sld [smem:[#allocation2 + $0x6]]  ;;  %s676_s11 = sld [smem:[#allocation2 + $0x7]]  ;;  %v988_v47 = vld [vmem:[#allocation6 + $0x48] sm:$0xff]  ;;  %v1000_v60 = vld [vmem:[#allocation6 + $0x50] sm:$0xff]  ;;  %v1002_v61 = vld [vmem:[#allocation6 + $0x58] sm:$0xff] }
  0x23   :  { %s915_s12 = sld [smem:[#allocation2 + $0x8]]  ;;  %s917_s1 = sld [smem:[#allocation2 + $0x9]] }
  0x24   :  { %s923_s13 = sld [smem:[#allocation2 + $0xc]]  ;;  %s925_s14 = sld [smem:[#allocation2 + $0xd]] }
  0x25   :  { %v164_v2 = vstv %s37_s4  ;;  %v213_v3 = vstv %s670_s5  ;;  %s938_s15 = sld [smem:[#allocation2 + $0x12]]  ;;  %s940_s16 = sld [smem:[#allocation2 + $0x13]] }
  0x26   :  { %v165_v6 = vmul.f32 %v164_v2, %v919_v0  ;;  %v166_v7 = vmul.f32 %v164_v2, %v921_v1  ;;  %v214_v8 = vmul.f32 %v213_v3, %v919_v0  ;;  %v215_v9 = vmul.f32 %v213_v3, %v921_v1  ;;  %s952_s17 = sld [smem:[#allocation2 + $0xe]]  ;;  %s954_s18 = sld [smem:[#allocation2 + $0x14]] }
  0x27   :  { %v262_v10 = vstv %s671_s6  ;;  %v311_v11 = vstv %s909_s7  ;;  %v360_v12 = vstv %s911_s8  ;;  %v409_v13 = vstv %s913_s9  ;;  %s964_s19 = sld [smem:[#allocation2 + $0x18]]  ;;  %s966_s20 = sld [smem:[#allocation2 + $0x19]] }
  0x28   :  { %v167_v14 = vstv %s675_s10  ;;  %v216_v15 = vstv %s676_s11  ;;  %v263_v16 = vmul.f32 %v262_v10, %v919_v0  ;;  %v264_v17 = vmul.f32 %v262_v10, %v921_v1  ;;  %s980_s21 = sld [smem:[#allocation2 + $0x1e]]  ;;  %s982_s22 = sld [smem:[#allocation2 + $0x1f]] }
  0x29   :  { %v168_v20 = vmul.f32 %v167_v14, %v927_v4  ;;  %v169_v21 = vmul.f32 %v167_v14, %v929_v5  ;;  %v217_v22 = vmul.f32 %v216_v15, %v927_v4  ;;  %v218_v23 = vmul.f32 %v216_v15, %v929_v5  ;;  %s994_s23 = sld [smem:[#allocation2 + $0x24]]  ;;  %s996_s24 = sld [smem:[#allocation2 + $0x25]] }
  0x2a   :  { %v265_v24 = vstv %s915_s12  ;;  %v958_v25 = vmul.f32 %v311_v11, %v919_v0  ;;  %v961_v26 = vmul.f32 %v311_v11, %v921_v1  ;;  %v314_v27 = vstv %s917_s1  ;;  %s1010_s25 = sld [smem:[#allocation2 + $0x2a]]  ;;  %s1012_s26 = sld [smem:[#allocation2 + $0x2b]] }
  0x2b   :  { %v170_v28 = vadd.f32 %v168_v20, %v165_v6  ;;  %v171_v29 = vadd.f32 %v169_v21, %v166_v7  ;;  %v172_v30 = vstv %s923_s13  ;;  %v219_v31 = vadd.f32 %v217_v22, %v214_v8  ;;  %s1022_s27 = sld [smem:[#allocation2 + $0x1a]]  ;;  %s1024_s28 = sld [smem:[#allocation2 + $0x20]] }
  0x2c   :  { %v173_v34 = vmul.f32 %v172_v30, %v944_v18  ;;  %v174_v35 = vmul.f32 %v172_v30, %v946_v19  ;;  %v220_v36 = vadd.f32 %v218_v23, %v215_v9  ;;  %v221_v37 = vstv %s925_s14  ;;  %s1030_s0 = sld [smem:[#allocation2 + $0x30]]  ;;  %s1032_s29 = sld [smem:[#allocation2 + $0x31]] }
  0x2d   :  { %v222_v38 = vmul.f32 %v221_v37, %v944_v18  ;;  %v223_v39 = vmul.f32 %v221_v37, %v946_v19  ;;  %v266_v40 = vmul.f32 %v265_v24, %v927_v4  ;;  %v267_v41 = vmul.f32 %v265_v24, %v929_v5  ;;  %v1036_v37 = vld [vmem:[#allocation6 + $0x70] sm:$0xff]  ;;  %s1044_s30 = sld [smem:[#allocation2 + $0x26]]  ;;  %s1048_s3 = sld [smem:[#allocation2 + $0x2c]] }
  0x2e   :  { %v175_v42 = vadd.f32 %v173_v34, %v170_v28  ;;  %v176_v43 = vadd.f32 %v174_v35, %v171_v29  ;;  %v177_v44 = vstv %s938_s15  ;;  %v226_v45 = vstv %s940_s16  ;;  %s1050_s4 = sld [smem:[#allocation2 + $0x32]]  ;;  %s1060_s5 = sld [smem:[#allocation2 + $0xf]] }
  0x2f   :  { %v178_v48 = vmul.f32 %v177_v44, %v969_v32  ;;  %v179_v49 = vmul.f32 %v177_v44, %v971_v33  ;;  %v224_v50 = vadd.f32 %v222_v38, %v219_v31  ;;  %v225_v51 = vadd.f32 %v223_v39, %v220_v36  ;;  %v1038_v38 = vld [vmem:[#allocation6 + $0x78] sm:$0xff]  ;;  %s1062_s6 = sld [smem:[#allocation2 + $0x15]]  ;;  %s1064_s7 = sld [smem:[#allocation2 + $0x1b]] }
  0x30   :  { %v227_v52 = vmul.f32 %v226_v45, %v969_v32  ;;  %v228_v53 = vmul.f32 %v226_v45, %v971_v33  ;;  %v268_v54 = vadd.f32 %v266_v40, %v263_v16  ;;  %v269_v55 = vadd.f32 %v267_v41, %v264_v17  ;;  %v1016_v16 = vld [vmem:[#allocation6 + $0x60] sm:$0xff]  ;;  %v1018_v17 = vld [vmem:[#allocation6 + $0x68] sm:$0xff]  ;;  %s1072_s10 = sld [smem:[#allocation2 + $0x21]]  ;;  %s1074_s11 = sld [smem:[#allocation2 + $0x27]] }
  0x31   :  { %v180_v56 = vadd.f32 %v178_v48, %v175_v42  ;;  %v181_v57 = vadd.f32 %v179_v49, %v176_v43  ;;  %v182_v58 = vstv %s964_s19  ;;  %v231_v59 = vstv %s966_s20  ;;  %s1083_s12 = sld [smem:[#allocation2 + $0x2d]]  ;;  %s1097_s13 = sld [smem:[#allocation2 + $0x33]] }
  0x32   :  { %v183_v62 = vmul.f32 %v182_v58, %v986_v46  ;;  %v184_v63 = vmul.f32 %v182_v58, %v988_v47  ;;  %v229_v2 = vadd.f32 %v227_v52, %v224_v50  ;;  %v230_v3 = vadd.f32 %v228_v53, %v225_v51  ;;  %s1104_s1 = sld [smem:[#allocation2 + $0xa]]  ;;  %s1106_s14 = sld [smem:[#allocation2 + $0x10]] }
  0x33   :  { %v232_v6 = vmul.f32 %v231_v59, %v986_v46  ;;  %v233_v7 = vmul.f32 %v231_v59, %v988_v47  ;;  %v270_v8 = vstv %s952_s17  ;;  %v275_v9 = vstv %s954_s18  ;;  %s1112_s15 = sld [smem:[#allocation2 + $0x16]]  ;;  %s1114_s16 = sld [smem:[#allocation2 + $0x1c]] }
  0x34   :  { %v185_v10 = vadd.f32 %v183_v62, %v180_v56  ;;  %v186_v11 = vadd.f32 %v184_v63, %v181_v57  ;;  %v187_v14 = vstv %s980_s21  ;;  %v236_v15 = vstv %s982_s22  ;;  %s1120_s17 = sld [smem:[#allocation2 + $0x22]]  ;;  %s1136_s18 = sld [smem:[#allocation2 + $0x28]] }
  0x35   :  { %v188_v20 = vmul.f32 %v187_v14, %v1000_v60  ;;  %v189_v21 = vmul.f32 %v187_v14, %v1002_v61  ;;  %v234_v22 = vadd.f32 %v232_v6, %v229_v2  ;;  %v235_v23 = vadd.f32 %v233_v7, %v230_v3  ;;  %s1138_s19 = sld [smem:[#allocation2 + $0x2e]]  ;;  %s1147_s20 = sld [smem:[#allocation2 + $0x34]] }
  0x36   :  { %v237_v24 = vmul.f32 %v236_v15, %v1000_v60  ;;  %v238_v28 = vmul.f32 %v236_v15, %v1002_v61  ;;  %v271_v29 = vmul.f32 %v270_v8, %v944_v18  ;;  %v272_v30 = vmul.f32 %v270_v8, %v946_v19  ;;  %s1152_s8 = sld [smem:[#allocation2 + $0xb]]  ;;  %s1154_s21 = sld [smem:[#allocation2 + $0x11]] }
  0x37   :  { %v190_v31 = vadd.f32 %v188_v20, %v185_v10  ;;  %v191_v34 = vadd.f32 %v189_v21, %v186_v11  ;;  %v192_v35 = vstv %s994_s23  ;;  %v241_v36 = vstv %s996_s24  ;;  %s1157_s22 = sld [smem:[#allocation2 + $0x17]]  ;;  %s1159_s23 = sld [smem:[#allocation2 + $0x1d]] }
  0x38   :  { %v193_v39 = vmul.f32 %v192_v35, %v1016_v16  ;;  %v194_v40 = vmul.f32 %v192_v35, %v1018_v17  ;;  %v239_v41 = vadd.f32 %v237_v24, %v234_v22  ;;  %v240_v42 = vadd.f32 %v238_v28, %v235_v23  ;;  %s1167_s24 = sld [smem:[#allocation2 + $0x23]]  ;;  %s1204_s9 = sld [smem:[#allocation2 + $0x3a]] }
  0x39   :  { %v242_v43 = vmul.f32 %v241_v36, %v1016_v16  ;;  %v243_v44 = vmul.f32 %v241_v36, %v1018_v17  ;;  %v273_v45 = vadd.f32 %v271_v29, %v268_v54  ;;  %v274_v48 = vadd.f32 %v272_v30, %v269_v55 }
  0x3a   :  { %v195_v49 = vadd.f32 %v193_v39, %v190_v31  ;;  %v196_v50 = vadd.f32 %v194_v40, %v191_v34  ;;  %v197_v51 = vstv %s1010_s25  ;;  %v246_v52 = vstv %s1012_s26  ;;  %s1169_s25 = sld [smem:[#allocation2 + $0x29]]  ;;  %s1188_s26 = sld [smem:[#allocation2 + $0x2f]] }
  0x3b   :  { %v198_v53 = vmul.f32 %v197_v51, %v1036_v37  ;;  %v199_v56 = vmul.f32 %v197_v51, %v1038_v38  ;;  %v244_v57 = vadd.f32 %v242_v43, %v239_v41  ;;  %v245_v58 = vadd.f32 %v243_v44, %v240_v42 }
  0x3c   :  { %v247_v54 = vmul.f32 %v246_v52, %v1036_v37  ;;  %v248_v55 = vmul.f32 %v246_v52, %v1038_v38  ;;  %v276_v59 = vmul.f32 %v275_v9, %v969_v32  ;;  %v277_v62 = vmul.f32 %v275_v9, %v971_v33 }
  0x3d   :  { %v200_v63 = vadd.f32 %v198_v53, %v195_v49  ;;  %v201_v2 = vadd.f32 %v199_v56, %v196_v50  ;;  %v202_v3 = vstv %s1030_s0  ;;  %v251_v6 = vstv %s1032_s29  ;;  %s1206_s0 = sld [smem:[#allocation2 + $0x3e]]  ;;  %s1212_s29 = sld [smem:[#allocation2 + $0x42]] }
  0x3e   :  { %v249_v7 = vadd.f32 %v247_v54, %v244_v57  ;;  %v250_v8 = vadd.f32 %v248_v55, %v245_v58  ;;  %v278_v10 = vadd.f32 %v276_v59, %v273_v45  ;;  %v279_v11 = vadd.f32 %v277_v62, %v274_v48 }
  0x3f   :  { %v203_v14 = vadd.f32 %v202_v3, %v200_v63  ;;  %v204_v15 = vadd.f32 %v202_v3, %v201_v2  ;;  %v280_v20 = vstv %s1022_s27  ;;  %v285_v21 = vstv %s1024_s28  ;;  %s1196_s27 = sld [smem:[#allocation2 + $0x35]]  ;;  %s1198_s28 = sld [smem:[#allocation2 + $0x36]] }
  0x40   :  { %v252_v9 = vadd.f32 %v251_v6, %v249_v7  ;;  %v253_v22 = vadd.f32 %v251_v6, %v250_v8  ;;  %v281_v23 = vmul.f32 %v280_v20, %v986_v46  ;;  %v282_v24 = vmul.f32 %v280_v20, %v988_v47 }
  0x41   :  { %v205_v28 = vmul.f32 0.5, %v203_v14  ;;  %v206_v29 = vmul.f32 0.5, %v204_v15  ;;  %v286_v30 = vmul.f32 %v285_v21, %v1000_v60  ;;  %v287_v31 = vmul.f32 %v285_v21, %v1002_v61 }
  0x42   :  { %v254_v34 = vmul.f32 0.5, %v252_v9  ;;  %v255_v35 = vmul.f32 0.5, %v253_v22  ;;  %v283_v36 = vadd.f32 %v281_v23, %v278_v10  ;;  %v284_v39 = vadd.f32 %v282_v24, %v279_v11 }
  0x43   :  { %761 = vtanh.f32 %v205_v28  ;;  %v290_v40 = vstv %s1044_s30  ;;  %v295_v41 = vstv %s1048_s3  ;;  %v300_v42 = vstv %s1050_s4  ;;  %s1214_s30 = sld [smem:[#allocation2 + $0x46]]  ;;  %s1219_s3 = sld [smem:[#allocation2 + $0x4a]] }
  0x44   :  { %763 = vtanh.f32 %v206_v29  ;;  %v288_v43 = vadd.f32 %v286_v30, %v283_v36  ;;  %v289_v44 = vadd.f32 %v287_v31, %v284_v39  ;;  %v291_v45 = vmul.f32 %v290_v40, %v1016_v16  ;;  %s1221_s4 = sld [smem:[#allocation2 + $0x4e]] }
  0x45   :  { %765 = vtanh.f32 %v254_v34  ;;  %v292_v48 = vmul.f32 %v290_v40, %v1018_v17  ;;  %v296_v49 = vmul.f32 %v295_v41, %v1036_v37  ;;  %v297_v50 = vmul.f32 %v295_v41, %v1038_v38 }
  0x46   :  { %767 = vtanh.f32 %v255_v35  ;;  %v293_v51 = vadd.f32 %v291_v45, %v288_v43  ;;  %v315_v52 = vmul.f32 %v314_v27, %v927_v4  ;;  %v316_v53 = vmul.f32 %v314_v27, %v929_v5 }
  0x47   :  { %v294_v56 = vadd.f32 %v292_v48, %v289_v44  ;;  %v319_v57 = vstv %s1060_s5  ;;  %v324_v58 = vstv %s1062_s6  ;;  %v329_v54 = vstv %s1064_s7  ;;  %s1227_s5 = sld [smem:[#allocation2 + $0x37]]  ;;  %s1229_s6 = sld [smem:[#allocation2 + $0x3b]] }
  0x48   :  { %v298_v55 = vadd.f32 %v296_v49, %v293_v51  ;;  %v317_v59 = vadd.f32 %v315_v52, %v958_v25  ;;  %v318_v62 = vadd.f32 %v316_v53, %v961_v26  ;;  %v320_v63 = vmul.f32 %v319_v57, %v944_v18  ;;  %s1239_s7 = sld [smem:[#allocation2 + $0x3f]] }
  0x49   :  { %v299_v2 = vadd.f32 %v297_v50, %v294_v56  ;;  %v321_v3 = vmul.f32 %v319_v57, %v946_v19  ;;  %v325_v27 = vmul.f32 %v324_v58, %v969_v32  ;;  %v326_v6 = vmul.f32 %v324_v58, %v971_v33 }
  0x4a   :  { %v301_v7 = vadd.f32 %v300_v42, %v298_v55  ;;  %v322_v8 = vadd.f32 %v320_v63, %v317_v59  ;;  %v330_v10 = vmul.f32 %v329_v54, %v986_v46  ;;  %v331_v25 = vmul.f32 %v329_v54, %v988_v47 }
  0x4b   :  { %v302_v26 = vadd.f32 %v300_v42, %v299_v2  ;;  %v323_v11 = vadd.f32 %v321_v3, %v318_v62  ;;  %v334_v14 = vstv %s1072_s10  ;;  %v339_v15 = vstv %s1074_s11  ;;  %s1241_s10 = sld [smem:[#allocation2 + $0x43]]  ;;  %s1251_s11 = sld [smem:[#allocation2 + $0x47]] }
  0x4c   :  { %v303_v20 = vmul.f32 0.5, %v301_v7  ;;  %v327_v21 = vadd.f32 %v325_v27, %v322_v8  ;;  %v335_v9 = vmul.f32 %v334_v14, %v1000_v60  ;;  %v336_v22 = vmul.f32 %v334_v14, %v1002_v61 }
  0x4d   :  { %v762_v23 = vpop.eup %761  ;;  %v304_v24 = vmul.f32 0.5, %v302_v26  ;;  %v328_v28 = vadd.f32 %v326_v6, %v323_v11  ;;  %v340_v29 = vmul.f32 %v339_v15, %v1016_v16  ;;  %v341_v30 = vmul.f32 %v339_v15, %v1018_v17 }
  0x4e   :  { %v764_v31 = vpop.eup %763  ;;  %v209_v34 = vmul.f32 0.5, %v762_v23  ;;  %769 = vtanh.f32 %v303_v20  ;;  %v332_v35 = vadd.f32 %v330_v10, %v327_v21  ;;  %v344_v36 = vstv %s1083_s12  ;;  %s1257_s12 = sld [smem:[#allocation2 + $0x4b]] }
  0x4f   :  { %v766_v39 = vpop.eup %765  ;;  %v210_v40 = vmul.f32 0.5, %v764_v31  ;;  %771 = vtanh.f32 %v304_v24  ;;  %v333_v41 = vadd.f32 %v331_v25, %v328_v28  ;;  %v345_v42 = vmul.f32 %v344_v36, %v1036_v37 }
  0x50   :  { %v768_v43 = vpop.eup %767  ;;  %v1122_v44 = vadd.f32 0.5, %v209_v34  ;;  %v258_v45 = vmul.f32 0.5, %v766_v39  ;;  %v337_v48 = vadd.f32 %v335_v9, %v332_v35  ;;  %v346_v49 = vmul.f32 %v344_v36, %v1038_v38 }
  0x51   :  { %v1125_v50 = vadd.f32 0.5, %v210_v40  ;;  %v259_v51 = vmul.f32 0.5, %v768_v43  ;;  %v338_v52 = vadd.f32 %v336_v22, %v333_v41  ;;  %v349_v53 = vstv %s1097_s13  ;;  %s1259_s13 = sld [smem:[#allocation2 + $0x4f]] }
  0x52   :  { %v1128_v56 = vadd.f32 0.5, %v258_v45  ;;  %v342_v57 = vadd.f32 %v340_v29, %v337_v48  ;;  %v361_v58 = vmul.f32 %v360_v12, %v919_v0  ;;  %v362_v54 = vmul.f32 %v360_v12, %v921_v1 }
  0x53   :  { %v1140_v55 = vadd.f32 0.5, %v259_v51  ;;  %v343_v59 = vadd.f32 %v341_v30, %v338_v52  ;;  %v363_v62 = vstv %s1104_s1  ;;  %v368_v63 = vstv %s1106_s14  ;;  %s1263_s1 = sld [smem:[#allocation2 + $0x38]]  ;;  %s1267_s14 = sld [smem:[#allocation2 + $0x3c]] }
  0x54   :  { %v347_v2 = vadd.f32 %v345_v42, %v342_v57  ;;  %v364_v3 = vmul.f32 %v363_v62, %v927_v4  ;;  %v365_v27 = vmul.f32 %v363_v62, %v929_v5  ;;  %v369_v6 = vmul.f32 %v368_v63, %v944_v18 }
  0x55   :  { %v348_v7 = vadd.f32 %v346_v49, %v343_v59  ;;  %v370_v12 = vmul.f32 %v368_v63, %v946_v19  ;;  %v373_v8 = vstv %s1112_s15  ;;  %v378_v10 = vstv %s1114_s16  ;;  %s1271_s15 = sld [smem:[#allocation2 + $0x40]]  ;;  %s1273_s16 = sld [smem:[#allocation2 + $0x44]] }
  0x56   :  { %v350_v25 = vadd.f32 %v349_v53, %v347_v2  ;;  %v366_v26 = vadd.f32 %v364_v3, %v361_v58  ;;  %v367_v11 = vadd.f32 %v365_v27, %v362_v54  ;;  %v374_v14 = vmul.f32 %v373_v8, %v969_v32 }
  0x57   :  { %v351_v15 = vadd.f32 %v349_v53, %v348_v7  ;;  %v375_v20 = vmul.f32 %v373_v8, %v971_v33  ;;  %v379_v21 = vmul.f32 %v378_v10, %v986_v46  ;;  %v380_v9 = vmul.f32 %v378_v10, %v988_v47 }
  0x58   :  { %v770_v22 = vpop.eup %769  ;;  %v352_v23 = vmul.f32 0.5, %v350_v25  ;;  %v371_v24 = vadd.f32 %v369_v6, %v366_v26  ;;  %v372_v28 = vadd.f32 %v370_v12, %v367_v11  ;;  %v383_v29 = vstv %s1120_s17  ;;  %s1277_s17 = sld [smem:[#allocation2 + $0x48]] }
  0x59   :  { %v772_v30 = vpop.eup %771  ;;  %v307_v31 = vmul.f32 0.5, %v770_v22  ;;  %v353_v34 = vmul.f32 0.5, %v351_v15  ;;  %v384_v35 = vmul.f32 %v383_v29, %v1000_v60  ;;  %v385_v36 = vmul.f32 %v383_v29, %v1002_v61 }
  0x5a   :  { %v308_v39 = vmul.f32 0.5, %v772_v30  ;;  %773 = vtanh.f32 %v352_v23  ;;  %v376_v40 = vadd.f32 %v374_v14, %v371_v24  ;;  %v377_v41 = vadd.f32 %v375_v20, %v372_v28 }
  0x5b   :  { %v1171_v42 = vadd.f32 0.5, %v307_v31  ;;  %775 = vtanh.f32 %v353_v34  ;;  %v388_v43 = vstv %s1136_s18  ;;  %v393_v45 = vstv %s1138_s19  ;;  %s1279_s18 = sld [smem:[#allocation2 + $0x4c]]  ;;  %s1290_s19 = sld [smem:[#allocation2 + $0x39]] }
  0x5c   :  { %v1175_v48 = vadd.f32 0.5, %v308_v39  ;;  %v381_v49 = vadd.f32 %v379_v21, %v376_v40  ;;  %v382_v51 = vadd.f32 %v380_v9, %v377_v41  ;;  %v389_v52 = vmul.f32 %v388_v43, %v1016_v16 }
  0x5d   :  { %v390_v53 = vmul.f32 %v388_v43, %v1018_v17  ;;  %v394_v57 = vmul.f32 %v393_v45, %v1036_v37  ;;  %v395_v58 = vmul.f32 %v393_v45, %v1038_v38  ;;  %v398_v54 = vstv %s1147_s20  ;;  %s1292_s20 = sld [smem:[#allocation2 + $0x50]] }
  0x5e   :  { %v386_v59 = vadd.f32 %v384_v35, %v381_v49  ;;  %v387_v62 = vadd.f32 %v385_v36, %v382_v51  ;;  %v410_v63 = vmul.f32 %v409_v13, %v919_v0  ;;  %v411_v2 = vmul.f32 %v409_v13, %v921_v1 }
  0x5f   :  { %v412_v3 = vstv %s1152_s8  ;;  %v417_v27 = vstv %s1154_s21  ;;  %v422_v6 = vstv %s1157_s22  ;;  %v427_v7 = vstv %s1159_s23  ;;  %s1296_s8 = sld [smem:[#allocation2 + $0x3d]]  ;;  %s1298_s21 = sld [smem:[#allocation2 + $0x41]] }
  0x60   :  { %v391_v12 = vadd.f32 %v389_v52, %v386_v59  ;;  %v392_v8 = vadd.f32 %v390_v53, %v387_v62  ;;  %v413_v10 = vmul.f32 %v412_v3, %v927_v4  ;;  %v414_v25 = vmul.f32 %v412_v3, %v929_v5  ;;  %s1325_s22 = sld [smem:[#allocation2 + $0x45]]  ;;  %s1330_s23 = sld [smem:[#allocation2 + $0x49]] }
  0x61   :  { %v418_v0 = vmul.f32 %v417_v27, %v944_v18  ;;  %v419_v1 = vmul.f32 %v417_v27, %v946_v19  ;;  %v423_v13 = vmul.f32 %v422_v6, %v969_v32  ;;  %v424_v26 = vmul.f32 %v422_v6, %v971_v33 }
  0x62   :  { %v396_v4 = vadd.f32 %v394_v57, %v391_v12  ;;  %v397_v11 = vadd.f32 %v395_v58, %v392_v8  ;;  %v415_v5 = vadd.f32 %v413_v10, %v410_v63  ;;  %v416_v14 = vadd.f32 %v414_v25, %v411_v2 }
  0x63   :  { %v428_v15 = vmul.f32 %v427_v7, %v986_v46  ;;  %v429_v20 = vmul.f32 %v427_v7, %v988_v47  ;;  %v432_v21 = vstv %s1167_s24  ;;  %v437_v18 = vstv %s1169_s25  ;;  %s1332_s24 = sld [smem:[#allocation2 + $0x4d]]  ;;  %s1348_s25 = sld [smem:[#allocation2 + $0x51]] }
  0x64   :  { %v774_v9 = vpop.eup %773  ;;  %v399_v19 = vadd.f32 %v398_v54, %v396_v4  ;;  %v400_v22 = vadd.f32 %v398_v54, %v397_v11  ;;  %v420_v32 = vadd.f32 %v418_v0, %v415_v5  ;;  %v421_v23 = vadd.f32 %v419_v1, %v416_v14 }
  0x65   :  { %v776_v33 = vpop.eup %775  ;;  %v356_v24 = vmul.f32 0.5, %v774_v9  ;;  %v433_v28 = vmul.f32 %v432_v21, %v1000_v60  ;;  %v434_v46 = vmul.f32 %v432_v21, %v1002_v61  ;;  %v438_v47 = vmul.f32 %v437_v18, %v1016_v16 }
  0x66   :  { %v357_v29 = vmul.f32 0.5, %v776_v33  ;;  %v401_v30 = vmul.f32 0.5, %v399_v19  ;;  %v402_v31 = vmul.f32 0.5, %v400_v22  ;;  %v425_v34 = vadd.f32 %v423_v13, %v420_v32 }
  0x67   :  { %v1223_v35 = vadd.f32 0.5, %v356_v24  ;;  %v426_v36 = vadd.f32 %v424_v26, %v421_v23  ;;  %v439_v60 = vmul.f32 %v437_v18, %v1018_v17  ;;  %v442_v61 = vstv %s1188_s26  ;;  %s1357_s26 = sld [smem:[#allocation2 + $0x52]] }
  0x68   :  { %v1231_v16 = vadd.f32 0.5, %v357_v29  ;;  %777 = vtanh.f32 %v401_v30  ;;  %v430_v39 = vadd.f32 %v428_v15, %v425_v34  ;;  %v443_v40 = vmul.f32 %v442_v61, %v1036_v37 }
  0x69   :  { %779 = vtanh.f32 %v402_v31  ;;  %v431_v41 = vadd.f32 %v429_v20, %v426_v36  ;;  %v444_v43 = vmul.f32 %v442_v61, %v1038_v38  ;;  %v447_v45 = vstv %s1196_s27  ;;  %s1360_s27 = sld [smem:[#allocation2 + $0x53]] }
  0x6a   :  { %v435_v49 = vadd.f32 %v433_v28, %v430_v39  ;;  %v458_v51 = vstv %s1198_s28  ;;  %v461_v17 = vstv %s1204_s9  ;;  %v466_v52 = vstv %s1206_s0  ;;  %s1362_s28 = sld [smem:[#allocation2 + $0x54]]  ;;  %s754_s9 = sld [smem:[#allocation2 + $0x55]] }
  0x6b   :  { %v436_v53 = vadd.f32 %v434_v46, %v431_v41  ;;  %v459_v57 = vmul.f32 %v458_v51, %v1122_v44  ;;  %v460_v37 = vmul.f32 %v458_v51, %v1125_v50  ;;  %v462_v58 = vmul.f32 %v461_v17, %v1128_v56  ;;  %s755_s0 = sld [smem:[#allocation2 + $0x56]] }
  0x6c   :  { %v440_v38 = vadd.f32 %v438_v47, %v435_v49  ;;  %v463_v54 = vmul.f32 %v461_v17, %v1140_v55  ;;  %v467_v59 = vmul.f32 %v466_v52, %v1171_v42  ;;  %v468_v62 = vmul.f32 %v466_v52, %v1175_v48 }
  0x6d   :  { %v441_v63 = vadd.f32 %v439_v60, %v436_v53  ;;  %v464_v2 = vadd.f32 %v462_v58, %v459_v57  ;;  %v471_v3 = vstv %s1212_s29  ;;  %v476_v27 = vstv %s1214_s30  ;;  %s869_s29 = smov [#allocation7]  }
  0x6e   :  { %v445_v6 = vadd.f32 %v443_v40, %v440_v38  ;;  %v465_v7 = vadd.f32 %v463_v54, %v460_v37  ;;  %v472_v12 = vmul.f32 %v471_v3, %v1223_v35  ;;  %v473_v8 = vmul.f32 %v471_v3, %v1231_v16  ;;  %s653_s30 = sshll.u32 %s869_s29, 4  ;;  %s654_s30 = int_to_ptr.vmem [resolvable:$true] %s653_s30 }
  0x6f   :  { %v446_v10 = vadd.f32 %v444_v43, %v441_v63  ;;  %v469_v25 = vadd.f32 %v467_v59, %v464_v2  ;;  %v481_v0 = vstv %s1219_s3  ;;  %v486_v1 = vstv %s1221_s4  ;;  %s837_s3 = scalar_lea.vmem %s654_s30, 256  ;;  %p842_p12 = scmp.lt.s32.totalorder %s654_s30, %s654_s30 }
  0x70   :  { %v448_v13 = vadd.f32 %v447_v45, %v445_v6  ;;  %v470_v26 = vadd.f32 %v468_v62, %v465_v7  ;;  %v497_v4 = vstv %s1227_s5  ;;  %v500_v11 = vstv %s1229_s6  ;;  %p838_p11 = scmp.ne.s32.totalorder %s654_s30, %s837_s3  ;;  %p843_p13 = scmp.lt.s32.totalorder %s837_s3, %s837_s3 }
  0x71   :  { %v449_v5 = vadd.f32 %v447_v45, %v446_v10  ;;  %v474_v14 = vadd.f32 %v472_v12, %v469_v25  ;;  %v498_v15 = vmul.f32 %v497_v4, %v1122_v44  ;;  %v499_v20 = vmul.f32 %v497_v4, %v1125_v50 }
  0x72   :  { %v778_v21 = vpop.eup %777  ;;  %v450_v18 = vmul.f32 0.5, %v448_v13  ;;  %v475_v9 = vadd.f32 %v473_v8, %v470_v26  ;;  %v501_v19 = vmul.f32 %v500_v11, %v1128_v56  ;;  %v502_v22 = vmul.f32 %v500_v11, %v1140_v55  ;;  %p844_p0 = por %p843_p13, %p842_p12 }
  0x73   :  { %v780_v32 = vpop.eup %779  ;;  %v405_v23 = vmul.f32 0.5, %v778_v21  ;;  %v451_v33 = vmul.f32 0.5, %v449_v5  ;;  %v505_v24 = vstv %s1239_s7  ;;  %v510_v28 = vstv %s1241_s10 }
  0x74   :  { %v406_v46 = vmul.f32 0.5, %v780_v32  ;;  %781 = vtanh.f32 %v450_v18  ;;  %v503_v47 = vadd.f32 %v501_v19, %v498_v15  ;;  %v504_v29 = vadd.f32 %v502_v22, %v499_v20  ;;  %p845_p1 = pnand %p844_p0, %p838_p11 }
  0x75   :  { %v1281_v30 = vadd.f32 0.5, %v405_v23  ;;  %783 = vtanh.f32 %v451_v33  ;;  %v506_v31 = vmul.f32 %v505_v24, %v1171_v42  ;;  %v507_v34 = vmul.f32 %v505_v24, %v1175_v48 }
  0x76   :  { %v1285_v36 = vadd.f32 0.5, %v406_v46  ;;  %v511_v60 = vmul.f32 %v510_v28, %v1223_v35  ;;  %v512_v61 = vmul.f32 %v510_v28, %v1231_v16  ;;  %v515_v39 = vstv %s1251_s11 }
  0x77   :  { %v477_v40 = vmul.f32 %v476_v27, %v1281_v30  ;;  %v508_v41 = vadd.f32 %v506_v31, %v503_v47  ;;  %v509_v43 = vadd.f32 %v507_v34, %v504_v29  ;;  %v516_v45 = vmul.f32 %v515_v39, %v1281_v30 }
  0x78   :  { %v478_v49 = vmul.f32 %v476_v27, %v1285_v36  ;;  %v517_v51 = vmul.f32 %v515_v39, %v1285_v36  ;;  %v520_v17 = vstv %s1257_s12  ;;  %v525_v52 = vstv %s1259_s13 }
  0x79   :  { %v479_v53 = vadd.f32 %v477_v40, %v474_v14  ;;  %v513_v57 = vadd.f32 %v511_v60, %v508_v41  ;;  %v514_v37 = vadd.f32 %v512_v61, %v509_v43  ;;  %v536_v58 = vstv %s1263_s1 }
  0x7a   :  { %v480_v38 = vadd.f32 %v478_v49, %v475_v9  ;;  %v537_v54 = vmul.f32 %v536_v58, %v1122_v44  ;;  %v538_v59 = vmul.f32 %v536_v58, %v1125_v50  ;;  %v539_v62 = vstv %s1267_s14 }
  0x7b   :  { %v518_v63 = vadd.f32 %v516_v45, %v513_v57  ;;  %v519_v2 = vadd.f32 %v517_v51, %v514_v37  ;;  %v540_v3 = vmul.f32 %v539_v62, %v1128_v56  ;;  %v541_v27 = vmul.f32 %v539_v62, %v1140_v55 }
  0x7c   :  { %v544_v6 = vstv %s1271_s15  ;;  %v549_v7 = vstv %s1273_s16  ;;  %v554_v12 = vstv %s1277_s17  ;;  %v559_v8 = vstv %s1279_s18 }
  0x7d   :  { %v542_v10 = vadd.f32 %v540_v3, %v537_v54  ;;  %v543_v25 = vadd.f32 %v541_v27, %v538_v59  ;;  %v545_v13 = vmul.f32 %v544_v6, %v1171_v42  ;;  %v546_v26 = vmul.f32 %v544_v6, %v1175_v48 }
  0x7e   :  { %v782_v4 = vpop.eup %781  ;;  %v550_v11 = vmul.f32 %v549_v7, %v1223_v35  ;;  %v551_v5 = vmul.f32 %v549_v7, %v1231_v16  ;;  %v555_v14 = vmul.f32 %v554_v12, %v1281_v30  ;;  %v556_v15 = vmul.f32 %v554_v12, %v1285_v36 }
  0x7f   :  { %v784_v20 = vpop.eup %783  ;;  %v454_v21 = vmul.f32 0.5, %v782_v4  ;;  %v547_v18 = vadd.f32 %v545_v13, %v542_v10  ;;  %v548_v9 = vadd.f32 %v546_v26, %v543_v25  ;;  %v564_v19 = vstv %s1292_s20 }
  0x80   :  { %v455_v22 = vmul.f32 0.5, %v784_v20  ;;  %v575_v32 = vstv %s1290_s19  ;;  %v578_v23 = vstv %s1296_s8  ;;  %v583_v33 = vstv %s1298_s21 }
  0x81   :  { %v456_v24 = vadd.f32 0.5, %v454_v21  ;;  %v552_v28 = vadd.f32 %v550_v11, %v547_v18  ;;  %v553_v46 = vadd.f32 %v551_v5, %v548_v9  ;;  %v576_v47 = vmul.f32 %v575_v32, %v1122_v44 }
  0x82   :  { %v457_v29 = vadd.f32 0.5, %v455_v22  ;;  %v577_v31 = vmul.f32 %v575_v32, %v1125_v50  ;;  %v579_v34 = vmul.f32 %v578_v23, %v1128_v56  ;;  %v580_v60 = vmul.f32 %v578_v23, %v1140_v55 }
  0x83   :  { %v482_v61 = vmul.f32 %v481_v0, %v456_v24  ;;  %v521_v39 = vmul.f32 %v520_v17, %v456_v24  ;;  %v557_v40 = vadd.f32 %v555_v14, %v552_v28  ;;  %v558_v44 = vadd.f32 %v556_v15, %v553_v46 }
  0x84   :  { %v483_v41 = vmul.f32 %v481_v0, %v457_v29  ;;  %v522_v43 = vmul.f32 %v520_v17, %v457_v29  ;;  %v560_v50 = vmul.f32 %v559_v8, %v456_v24  ;;  %v561_v56 = vmul.f32 %v559_v8, %v457_v29 }
  0x85   :  { %v484_v45 = vadd.f32 %v482_v61, %v479_v53  ;;  %v523_v55 = vadd.f32 %v521_v39, %v518_v63  ;;  %v581_v49 = vadd.f32 %v579_v34, %v576_v47  ;;  %v582_v51 = vadd.f32 %v580_v60, %v577_v31 }
  0x86   :  { %v485_v57 = vadd.f32 %v483_v41, %v480_v38  ;;  %v524_v37 = vadd.f32 %v522_v43, %v519_v2  ;;  %v562_v58 = vadd.f32 %v560_v50, %v557_v40  ;;  %v563_v54 = vadd.f32 %v561_v56, %v558_v44 }
  0x87   :  { %v487_v59 = vadd.f32 %v486_v1, %v484_v45  ;;  %v526_v62 = vadd.f32 %v525_v52, %v523_v55  ;;  %v584_v3 = vmul.f32 %v583_v33, %v1171_v42  ;;  %v585_v0 = vmul.f32 %v583_v33, %v1175_v48 }
  0x88   :  { %v488_v17 = vadd.f32 %v486_v1, %v485_v57  ;;  %v527_v53 = vadd.f32 %v525_v52, %v524_v37  ;;  %v565_v63 = vadd.f32 %v564_v19, %v562_v58  ;;  %v566_v38 = vadd.f32 %v564_v19, %v563_v54 }
  0x89   :  { %v489_v2 = vmul.f32 0.5, %v487_v59  ;;  %v528_v27 = vmul.f32 0.5, %v526_v62  ;;  %v586_v6 = vadd.f32 %v584_v3, %v581_v49  ;;  %v587_v7 = vadd.f32 %v585_v0, %v582_v51 }
  0x8a   :  { %v490_v12 = vmul.f32 0.5, %v488_v17  ;;  %v529_v8 = vmul.f32 0.5, %v527_v53  ;;  %v567_v42 = vmul.f32 0.5, %v565_v63  ;;  %v568_v10 = vmul.f32 0.5, %v566_v38 }
  0x8b   :  { %785 = vtanh.f32 %v489_v2  ;;  %v588_v48 = vstv %s1325_s22  ;;  %v593_v25 = vstv %s1330_s23  ;;  %v598_v13 = vstv %s1332_s24 }
  0x8c   :  { %787 = vtanh.f32 %v490_v12  ;;  %v589_v1 = vmul.f32 %v588_v48, %v1223_v35  ;;  %v590_v52 = vmul.f32 %v588_v48, %v1231_v16  ;;  %v594_v26 = vmul.f32 %v593_v25, %v1281_v30 }
  0x8d   :  { %789 = vtanh.f32 %v528_v27  ;;  %v595_v4 = vmul.f32 %v593_v25, %v1285_v36  ;;  %v599_v11 = vmul.f32 %v598_v13, %v456_v24  ;;  %v600_v15 = vmul.f32 %v598_v13, %v457_v29 }
  0x8e   :  { %791 = vtanh.f32 %v529_v8  ;;  %v591_v5 = vadd.f32 %v589_v1, %v586_v6  ;;  %v592_v14 = vadd.f32 %v590_v52, %v587_v7  ;;  %v603_v18 = vstv %s1348_s25 }
  0x8f   :  { %793 = vtanh.f32 %v567_v42  ;;  %v614_v34 = vstv %s1357_s26  ;;  %v617_v44 = vstv %s1360_s27  ;;  %v622_v57 = vstv %s1362_s28 }
  0x90   :  { %795 = vtanh.f32 %v568_v10  ;;  %v596_v20 = vadd.f32 %v594_v26, %v591_v5  ;;  %v597_v21 = vadd.f32 %v595_v4, %v592_v14  ;;  %v627_v53 = vstv %s754_s9 }
  0x91   :  { %v632_v12 = vstv %s755_s0 }
  0x92   :  { %v601_v35 = vadd.f32 %v599_v11, %v596_v20  ;;  %v602_v16 = vadd.f32 %v600_v15, %v597_v21 }
  0x94   :  { %v604_v30 = vadd.f32 %v603_v18, %v601_v35  ;;  %v605_v9 = vadd.f32 %v603_v18, %v602_v16 }
  0x95   :  { %v786_v36 = vpop.eup %785 }
  0x96   :  { %v788_v19 = vpop.eup %787  ;;  %v493_v22 = vmul.f32 0.5, %v786_v36  ;;  %v606_v32 = vmul.f32 0.5, %v604_v30  ;;  %v607_v23 = vmul.f32 0.5, %v605_v9 }
  0x97   :  { %v790_v33 = vpop.eup %789  ;;  %v494_v24 = vmul.f32 0.5, %v788_v19 }
  0x98   :  { %v792_v28 = vpop.eup %791  ;;  %v532_v46 = vmul.f32 0.5, %v790_v33  ;;  %797 = vtanh.f32 %v606_v32  ;;  %v495_v29 = vadd.f32 0.5, %v493_v22 }
  0x99   :  { %v794_v47 = vpop.eup %793  ;;  %v533_v31 = vmul.f32 0.5, %v792_v28  ;;  %799 = vtanh.f32 %v607_v23  ;;  %v496_v61 = vadd.f32 0.5, %v494_v24 }
  0x9a   :  { %v796_v60 = vpop.eup %795  ;;  %v534_v39 = vadd.f32 0.5, %v532_v46  ;;  %v571_v40 = vmul.f32 0.5, %v794_v47  ;;  %v615_v56 = vmul.f32 %v614_v34, %v495_v29 }
  0x9b   :  { %v535_v41 = vadd.f32 0.5, %v533_v31  ;;  %v572_v43 = vmul.f32 0.5, %v796_v60  ;;  %v616_v49 = vmul.f32 %v614_v34, %v496_v61 }
  0x9c   :  { %v573_v50 = vadd.f32 0.5, %v571_v40  ;;  %v618_v45 = vmul.f32 %v617_v44, %v534_v39 }
  0x9d   :  { %v574_v55 = vadd.f32 0.5, %v572_v43  ;;  %v619_v51 = vmul.f32 %v617_v44, %v535_v41 }
  0x9e   :  { %v620_v37 = vadd.f32 %v618_v45, %v615_v56  ;;  %v623_v58 = vmul.f32 %v622_v57, %v573_v50 }
  0x9f   :  { %v621_v59 = vadd.f32 %v619_v51, %v616_v49  ;;  %v624_v62 = vmul.f32 %v622_v57, %v574_v55 }
  0xa0   :  { %v625_v38 = vadd.f32 %v623_v58, %v620_v37 }
  0xa1   :  { %v626_v27 = vadd.f32 %v624_v62, %v621_v59 }
  0xa2   :  { %v798_v54 = vpop.eup %797 }
  0xa3   :  { %v800_v3 = vpop.eup %799  ;;  %v610_v0 = vmul.f32 0.5, %v798_v54 }
  0xa4   :  { %v611_v17 = vmul.f32 0.5, %v800_v3 }
  0xa5   :  { %v612_v63 = vadd.f32 0.5, %v610_v0 }
  0xa6   :  { %v613_v2 = vadd.f32 0.5, %v611_v17 }
  0xa7   :  { %v628_v6 = vmul.f32 %v627_v53, %v612_v63 }
  0xa8   :  { %v629_v7 = vmul.f32 %v627_v53, %v613_v2 }
  0xa9   :  { %v630_v8 = vadd.f32 %v628_v6, %v625_v38 }
  0xaa   :  { %v631_v42 = vadd.f32 %v629_v7, %v626_v27 }
  0xab   :  { %v633_v10 = vadd.f32 %v632_v12, %v630_v8 }
  0xac   :  { %v634_v48 = vadd.f32 %v632_v12, %v631_v42 }
  0xad   :  { %v635_v25 = vmul.f32 0.5, %v633_v10 }
  0xae   :  { %v636_v13 = vmul.f32 0.5, %v634_v48 }
  0xaf   :  { %801 = vtanh.f32 %v635_v25 }
  0xb0   :  { %803 = vtanh.f32 %v636_v13 }
  0xb9   :  { %v802_v1 = vpop.eup %801 }
  0xba   :  { %v804_v52 = vpop.eup %803  ;;  %v639_v26 = vmul.f32 0.5, %v802_v1 }
  0xbb   :  { %v640_v4 = vmul.f32 0.5, %v804_v52 }
  0xbc   :  { %v641_v11 = vadd.f32 0.5, %v639_v26 }
  0xbd   :  { %v642_v5 = vadd.f32 0.5, %v640_v4 }
  0xbe   :  { %645 = vst [vmem:[#allocation7] sm:$0xff] %v641_v11 }
  0xbf   :  { %646 = vst [vmem:[#allocation7 + $0x8] sm:$0xff] %v642_v5 }
  0xc0   :  { %848 = shalt.err (!%p845_p1)
}
  0xc1   :  { %s849_s6 = scalar_lea.hbm %s1381_s2, 256 }
  0xc2   :  { %p850_p2 = scmp.ne.s32.totalorder %s1381_s2, %s849_s6  ;;  %p853_p3 = scmp.lt.u32.totalorder %s849_s6, %s1381_s2 }
  0xc4   :  { %p855_p4 = pnand %p853_p3, %p850_p2 }
  0xc6   :  { %858 = shalt.err (!%p855_p4)
}
  0xc7   :  { %656 = dma.vmem_to_hbm [thread:$0]  %s654_s30, 256, %s1381_s2, [#allocation4]  }
  0xc8   :  { %863 = dma.done.wait [#allocation4], 256  }
  0xc9   :  { %864 = vsyncadd [#allocation4], 4294967040 }
  0xca   :  { %660 = vsyncpa [#allocation3], 1 }
  0xcb   :  { %661 = vsyncpa [#allocation4], 1 }
  0xcc   :  { %662 = vsyncpa [#allocation5], 1 }

</bundles_post_ra>
